<compile_context>
chip_gen: v5e
topology: v5e:2x2
jax: 0.10.0
libtpu: 0.0.40
codegen_flags: <defaults>
</compile_context>

<pallas_src>
import functools
import math

import jax
import jax.numpy as jnp
from jax.experimental import pallas as pl
from jax.experimental.pallas import tpu as pltpu

OUT_PAD = 128     # lane-dense padded width of the classifier head / kernel output
NEG_INF = -1e30   # finite "minus infinity" baked into padded logit lanes


def _round_up(n, m):
    return -(-n // m) * m


# ---------------------------------------------------------------------------
# Fused kernel: full TCN forward for the whole batch in one grid step.
#   refs: x_ref (B, L, C0), w_ref (R, 128) bf16 slab, b_ref (8k, 128) f32 slab,
#         out_ref (B, OUT_PAD), hp_ref VMEM scratch (B, pad_max + L, c_max) f32
# ---------------------------------------------------------------------------
def _tcn_fused_kernel(x_ref, w_ref, b_ref, out_ref, hp_ref, *,
                      cfgs, head, B, L, K, pad_max):
    # Zero the causal left-padding rows once; they are never written again, so
    # every conv in every block reads genuine zeros for its history.
    hp_ref[:, :pad_max, :] = jnp.zeros((B, pad_max, hp_ref.shape[-1]), jnp.float32)

    def wslice(off, rows, cols):               # static slice of the weight slab
        return w_ref[off:off + rows, :cols]    # bf16 (rows, cols)

    def brow(i, cols):                          # one bias row, broadcastable
        return b_ref[i:i + 1, :cols]            # f32 (1, cols)

    def conv_full(cin, cout, cin8, d, woff, brow_i):
        """Causal dilated conv over the staged input -> (B, L, cout) f32.
        K accumulated MXU matmuls with M = B*L (batch folded)."""
        pad = (K - 1) * d
        acc = jnp.zeros((B * L, cout), jnp.float32)
        for j in range(K):
            start = pad_max - pad + j * d
            win = hp_ref[:, start:start + L, :cin].reshape(B * L, cin)
            acc += jnp.dot(win.astype(jnp.bfloat16),
                           wslice(woff + j * cin8, cin, cout),
                           preferred_element_type=jnp.float32)
        return (acc + brow(brow_i, cout)).reshape(B, L, cout)

    def conv_last_step(h_in, cin, cout, cin8, d, woff, brow_i):
        """Same causal conv but only for output time t = L-1 (input in registers)."""
        acc = jnp.zeros((B, cout), jnp.float32)
        for j in range(K):
            t = (L - 1) - (K - 1 - j) * d
            if t < 0:
                continue                        # zero-padded history: no contribution
            acc += jnp.dot(h_in[:, t, :].astype(jnp.bfloat16),
                           wslice(woff + j * cin8, cin, cout),
                           preferred_element_type=jnp.float32)
        return acc + brow(brow_i, cout)

    h = x_ref[...].astype(jnp.float32)          # (B, L, C0)
    n_blocks = len(cfgs)
    o_last = None
    for bi, c in enumerate(cfgs):
        last = bi == n_blocks - 1
        # stage the block input in the padded scratch (pad rows already zero)
        hp_ref[:, pad_max:pad_max + L, :c["cin"]] = h
        h1 = jnp.maximum(conv_full(c["cin"], c["cout"], c["cin8"], c["dilation"],
                                   c["w1_off"], c["b1_row"]), 0.0)      # conv1+chomp+relu1
        if not last:
            hp_ref[:, pad_max:pad_max + L, :c["cout"]] = h1
            h2 = jnp.maximum(conv_full(c["cout"], c["cout"], c["cout8"], c["dilation"],
                                       c["w2_off"], c["b2_row"]), 0.0)  # conv2+chomp+relu2
            if c["has_ds"]:
                res = (jnp.dot(h.reshape(B * L, c["cin"]).astype(jnp.bfloat16),
                               wslice(c["wd_off"], c["cin"], c["cout"]),
                               preferred_element_type=jnp.float32)
                       + brow(c["bd_row"], c["cout"])).reshape(B, L, c["cout"])
            else:
                res = h
            h = jnp.maximum(h2 + res, 0.0)                               # residual + block ReLU
        else:
            # Head only consumes t = L-1: compute conv2 / residual / ReLU on one row.
            h2 = jnp.maximum(conv_last_step(h1, c["cout"], c["cout"], c["cout8"],
                                            c["dilation"], c["w2_off"], c["b2_row"]), 0.0)
            h_last = h[:, L - 1, :]                                       # (B, cin)
            if c["has_ds"]:
                res = jnp.dot(h_last.astype(jnp.bfloat16),
                              wslice(c["wd_off"], c["cin"], c["cout"]),
                              preferred_element_type=jnp.float32) + brow(c["bd_row"], c["cout"])
            else:
                res = h_last
            o_last = jnp.maximum(h2 + res, 0.0)                           # (B, cout)

    # Linear head + log_softmax. Padded lanes already carry NEG_INF via the bias.
    logits = jnp.dot(o_last.astype(jnp.bfloat16),
                     wslice(head["w_off"], head["c_last"], OUT_PAD),
                     preferred_element_type=jnp.float32) + brow(head["b_row"], OUT_PAD)
    m = jnp.max(logits, axis=1, keepdims=True)
    lse = jnp.log(jnp.sum(jnp.exp(logits - m), axis=1, keepdims=True)) + m
    out_ref[...] = logits - lse                                           # F.log_softmax(dim=1)


# ---------------------------------------------------------------------------
# Wrapper: single pallas_call, whole batch in one step, 3 input DMAs.
# ---------------------------------------------------------------------------
def tcn_forward(x_ncl, prep, *, K):
    """TCN.forward. Input in PyTorch NCL layout (B, C, L); returns (B, output_size)."""
    B, C0, L = x_ncl.shape
    x = jnp.transpose(x_ncl, (0, 2, 1)).astype(jnp.float32)   # (B, L, C0) time-major

    kernel = functools.partial(_tcn_fused_kernel, cfgs=prep["cfgs"], head=prep["head"],
                               B=B, L=L, K=K, pad_max=prep["pad_max"])
    out = pl.pallas_call(
        kernel,
        out_shape=jax.ShapeDtypeStruct((B, OUT_PAD), jnp.float32),
        grid=(1,),
        in_specs=[pl.BlockSpec((B, L, C0), lambda i: (0, 0, 0)),
                  pl.BlockSpec(prep["wslab"].shape, lambda i: (0, 0)),
                  pl.BlockSpec(prep["bslab"].shape, lambda i: (0, 0))],
        out_specs=pl.BlockSpec((B, OUT_PAD), lambda i: (0, 0)),
        scratch_shapes=[pltpu.VMEM((B, prep["pad_max"] + L, prep["c_max"]), jnp.float32)],
        compiler_params=pltpu.CompilerParams(dimension_semantics=("arbitrary",)),
    )(x, prep["wslab"], prep["bslab"])
    return out[:, :prep["head"]["out_dim"]]


# ---------------------------------------------------------------------------
# Deterministic parameters in PyTorch layout + one-time kernel-layout repack.
# ---------------------------------------------------------------------------
def _xavier_uniform(key, shape):
    o, i, k = shape
    a = math.sqrt(6.0 / ((i + o) * k))
    return jax.random.uniform(key, shape, jnp.float32, minval=-a, maxval=a)


def _uniform_bias(key, n, fan_in):
    a = 1.0 / math.sqrt(fan_in)
    return jax.random.uniform(key, (n,), jnp.float32, minval=-a, maxval=a)


def make_tcn_params(key, input_size, output_size, num_channels, K):
    blocks = []
    for i, out_c in enumerate(num_channels):
        key, sub = jax.random.split(key)
        ks = jax.random.split(sub, 6)
        in_c = input_size if i == 0 else num_channels[i - 1]
        has_ds = in_c != out_c
        blocks.append(dict(
            w1=_xavier_uniform(ks[0], (out_c, in_c, K)),
            b1=_uniform_bias(ks[1], out_c, in_c * K),
            w2=_xavier_uniform(ks[2], (out_c, out_c, K)),
            b2=_uniform_bias(ks[3], out_c, out_c * K),
            wd=(_xavier_uniform(ks[4], (out_c, in_c, 1)) if has_ds
                else jnp.zeros((out_c, in_c, 1), jnp.float32)),
            bd=(_uniform_bias(ks[5], out_c, in_c) if has_ds
                else jnp.zeros((out_c,), jnp.float32)),
            has_downsample=has_ds,
            dilation=2 ** i,
        ))
    k1, k2 = jax.random.split(key)
    c_last = num_channels[-1]
    a = 1.0 / math.sqrt(c_last)
    lin_w = jax.random.uniform(k1, (output_size, c_last), jnp.float32, minval=-a, maxval=a)
    lin_b = jax.random.uniform(k2, (output_size,), jnp.float32, minval=-a, maxval=a)
    return dict(blocks=blocks, lin_w=lin_w, lin_b=lin_b)


def prepare_params(params, K):
    """One-time repack (outside the hot path):
       - every conv tap W_j = w[:, :, j].T placed at consecutive 8-row-aligned
         offsets inside ONE (R, 128) bf16 weight slab (downsample + linear too),
       - all biases packed as rows of ONE small (8k, 128) f32 slab; the linear
         bias row carries NEG_INF in lanes >= out_dim so no mask is needed."""
    slab_parts, bias_rows = [], []
    cursor = 0

    def place(mat):                       # (r, c) f32 -> 8-aligned row offset in slab
        nonlocal cursor
        r, c = mat.shape
        r8 = _round_up(r, 8)
        slab_parts.append(jnp.zeros((r8, 128), jnp.float32).at[:r, :c].set(mat))
        off = cursor
        cursor += r8
        return off

    def place_bias(vec, fill=0.0):
        bias_rows.append(jnp.full((128,), fill, jnp.float32).at[:vec.shape[0]].set(vec))
        return len(bias_rows) - 1

    cfgs = []
    n_blocks = len(params["blocks"])
    c_max, pad_max = 1, 1
    for bi, p in enumerate(params["blocks"]):
        out_c, in_c, K_ = p["w1"].shape
        d = p["dilation"]
        cin8, cout8 = _round_up(in_c, 8), _round_up(out_c, 8)
        w1_off = place(p["w1"][:, :, 0].T)
        for j in range(1, K_):
            place(p["w1"][:, :, j].T)
        b1_row = place_bias(p["b1"])
        w2_off = place(p["w2"][:, :, 0].T)
        for j in range(1, K_):
            place(p["w2"][:, :, j].T)
        b2_row = place_bias(p["b2"])
        cfg = dict(cin=in_c, cout=out_c, cin8=cin8, cout8=cout8, dilation=d,
                   w1_off=w1_off, b1_row=b1_row, w2_off=w2_off, b2_row=b2_row,
                   has_ds=bool(p["has_downsample"]), wd_off=-1, bd_row=-1)
        if cfg["has_ds"]:
            cfg["wd_off"] = place(p["wd"][:, :, 0].T)
            cfg["bd_row"] = place_bias(p["bd"])
        cfgs.append(cfg)
        # staged widths: block input always; block's conv2 input only if not last
        c_max = max(c_max, in_c if bi == n_blocks - 1 else max(in_c, out_c))
        pad_max = max(pad_max, (K - 1) * d)

    out_dim, c_last = params["lin_w"].shape
    w_off = place(params["lin_w"].T)                         # (c_last, out_dim) in 128 lanes
    b_row = place_bias(params["lin_b"], fill=NEG_INF)        # padded lanes = NEG_INF
    head = dict(w_off=w_off, b_row=b_row, c_last=c_last, out_dim=out_dim)

    wslab = jnp.concatenate(slab_parts, axis=0).astype(jnp.bfloat16)
    nb = _round_up(len(bias_rows), 8)
    bslab = jnp.zeros((nb, 128), jnp.float32).at[:len(bias_rows), :].set(jnp.stack(bias_rows))
    return dict(wslab=wslab, bslab=bslab, cfgs=tuple(cfgs), head=head,
                pad_max=_round_up(pad_max, 8), c_max=c_max)


# ---------------------------------------------------------------------------
# Pure-JAX reference (mirrors PyTorch semantics in NCL layout) for validation.
# ---------------------------------------------------------------------------
def _conv1d_ref(x, w, b, dilation, padding):
    out = jax.lax.conv_general_dilated(
        x, w, window_strides=(1,), padding=[(padding, padding)],
        rhs_dilation=(dilation,), dimension_numbers=("NCH", "OIH", "NCH"))
    return out + b[None, :, None]


def _temporal_block_ref(x, p, K):
    d = p["dilation"]
    pad = (K - 1) * d
    h = jnp.maximum(_conv1d_ref(x, p["w1"], p["b1"], d, pad)[:, :, :-pad], 0.0)
    o = jnp.maximum(_conv1d_ref(h, p["w2"], p["b2"], d, pad)[:, :, :-pad], 0.0)
    res = _conv1d_ref(x, p["wd"], p["bd"], 1, 0) if p["has_downsample"] else x
    return jnp.maximum(o + res, 0.0)


def tcn_reference(x, params, K):
    h = x
    for blk in params["blocks"]:
        h = _temporal_block_ref(h, blk, K)
    logits = h[:, :, -1] @ params["lin_w"].T + params["lin_b"][None, :]
    return jax.nn.log_softmax(logits, axis=1)


if __name__ == "__main__":
    B, L = 2, 32
    input_size = 4
    num_channels = (16, 32)
    output_size = 8
    K = 7                      # module-level kernel_size in the original script
    # dropout = 0.05 -> identity in eval; weight_norm folded into the conv weight.

    key = jax.random.PRNGKey(0)
    kp, kx = jax.random.split(key)
    params = make_tcn_params(kp, input_size, output_size, num_channels, K)
    prep = prepare_params(params, K)
    x = jax.random.normal(kx, (B, input_size, L), jnp.float32)   # PyTorch NCL layout

    out = jax.block_until_ready(tcn_forward(x, prep, K=K))
    ref = jax.block_until_ready(tcn_reference(x, params, K))

    assert out.shape == (B, output_size), out.shape
    err = float(jnp.max(jnp.abs(out - ref)))
    assert jnp.allclose(out, ref, rtol=2e-3, atol=2e-3), err
    print("KERNEL_OK")
</pallas_src>

<mosaic_0001>
module attributes {stable_mosaic.version = 11 : i64} {
  func.func @_tcn_fused_kernel(%arg0: i32, %arg1: memref<2x32x4xf32, #tpu.memory_space<vmem>>, %arg2: memref<560x128xbf16, #tpu.memory_space<vmem>>, %arg3: memref<8x128xf32, #tpu.memory_space<vmem>>, %arg4: memref<2x128xf32, #tpu.memory_space<vmem>>, %arg5: memref<2x48x16xf32, #tpu.memory_space<vmem>>) attributes {dimension_semantics = [#tpu.dimension_semantics<arbitrary>], iteration_bounds = array<i64: 1>, scalar_prefetch = 0 : i64, scratch_operands = 1 : i64, tpu.core_type = #tpu.core_type<tc>, window_params = [{pipeline_mode = #tpu.pipeline_mode<synchronous>, transform_indices = @transform_0, window_bounds = array<i64: 2, 32, 4>}, {pipeline_mode = #tpu.pipeline_mode<synchronous>, transform_indices = @transform_1, window_bounds = array<i64: 560, 128>}, {pipeline_mode = #tpu.pipeline_mode<synchronous>, transform_indices = @transform_2, window_bounds = array<i64: 8, 128>}, {pipeline_mode = #tpu.pipeline_mode<synchronous>, transform_indices = @transform_3, window_bounds = array<i64: 2, 128>}]} {
    %cst = arith.constant 0.000000e+00 : f32
    %0 = vector.broadcast %cst : f32 to vector<2x16x16xf32>
    %c0 = arith.constant 0 : index
    %c0_0 = arith.constant 0 : index
    %c0_1 = arith.constant 0 : index
    %1 = vector.load %arg5[%c0, %c0_0, %c0_1] : memref<2x48x16xf32, #tpu.memory_space<vmem>>, vector<2x16x16xf32>
    tpu.vector_store %arg5[%c0, %c0_0, %c0_1], %0 {strides = array<i32>} : memref<2x48x16xf32, #tpu.memory_space<vmem>>, vector<2x16x16xf32>,
    %c0_2 = arith.constant 0 : index
    %c0_3 = arith.constant 0 : index
    %c0_4 = arith.constant 0 : index
    %2 = vector.load %arg1[%c0_2, %c0_3, %c0_4] : memref<2x32x4xf32, #tpu.memory_space<vmem>>, vector<2x32x4xf32>
    %c0_5 = arith.constant 0 : index
    %c16 = arith.constant 16 : index
    %c0_6 = arith.constant 0 : index
    %3 = vector.load %arg5[%c0_5, %c16, %c0_6] : memref<2x48x16xf32, #tpu.memory_space<vmem>>, vector<2x32x4xf32>
    tpu.vector_store %arg5[%c0_5, %c16, %c0_6], %2 {strides = array<i32>} : memref<2x48x16xf32, #tpu.memory_space<vmem>>, vector<2x32x4xf32>,
    %cst_7 = arith.constant 0.000000e+00 : f32
    %4 = vector.broadcast %cst_7 : f32 to vector<64x16xf32>
    %c0_8 = arith.constant 0 : index
    %c10 = arith.constant 10 : index
    %c0_9 = arith.constant 0 : index
    %5 = vector.load %arg5[%c0_8, %c10, %c0_9] : memref<2x48x16xf32, #tpu.memory_space<vmem>>, vector<2x32x4xf32>
    %6 = vector.shape_cast %5 : vector<2x32x4xf32> to vector<64x4xf32>
    %7 = arith.truncf %6 : vector<64x4xf32> to vector<64x4xbf16>
    %c0_10 = arith.constant 0 : index
    %c0_11 = arith.constant 0 : index
    %8 = vector.load %arg2[%c0_10, %c0_11] : memref<560x128xbf16, #tpu.memory_space<vmem>>, vector<4x16xbf16>
    %cst_12 = arith.constant dense<0.000000e+00> : vector<64x16xf32>
    %9 = tpu.matmul %7, %8, %cst_12 {dimension_numbers = #tpu.dot_dimension_numbers<[1], [0], [0], [1], [0, 0, 1, 1], [], []>} : vector<64x4xbf16>, vector<4x16xbf16>, vector<64x16xf32> -> vector<64x16xf32>
    %10 = arith.addf %4, %9 : vector<64x16xf32>
    %c0_13 = arith.constant 0 : index
    %c11 = arith.constant 11 : index
    %c0_14 = arith.constant 0 : index
    %11 = vector.load %arg5[%c0_13, %c11, %c0_14] : memref<2x48x16xf32, #tpu.memory_space<vmem>>, vector<2x32x4xf32>
    %12 = vector.shape_cast %11 : vector<2x32x4xf32> to vector<64x4xf32>
    %13 = arith.truncf %12 : vector<64x4xf32> to vector<64x4xbf16>
    %c8 = arith.constant 8 : index
    %c0_15 = arith.constant 0 : index
    %14 = vector.load %arg2[%c8, %c0_15] : memref<560x128xbf16, #tpu.memory_space<vmem>>, vector<4x16xbf16>
    %cst_16 = arith.constant dense<0.000000e+00> : vector<64x16xf32>
    %15 = tpu.matmul %13, %14, %cst_16 {dimension_numbers = #tpu.dot_dimension_numbers<[1], [0], [0], [1], [0, 0, 1, 1], [], []>} : vector<64x4xbf16>, vector<4x16xbf16>, vector<64x16xf32> -> vector<64x16xf32>
    %16 = arith.addf %10, %15 : vector<64x16xf32>
    %c0_17 = arith.constant 0 : index
    %c12 = arith.constant 12 : index
    %c0_18 = arith.constant 0 : index
    %17 = vector.load %arg5[%c0_17, %c12, %c0_18] : memref<2x48x16xf32, #tpu.memory_space<vmem>>, vector<2x32x4xf32>
    %18 = vector.shape_cast %17 : vector<2x32x4xf32> to vector<64x4xf32>
    %19 = arith.truncf %18 : vector<64x4xf32> to vector<64x4xbf16>
    %c16_19 = arith.constant 16 : index
    %c0_20 = arith.constant 0 : index
    %20 = vector.load %arg2[%c16_19, %c0_20] : memref<560x128xbf16, #tpu.memory_space<vmem>>, vector<4x16xbf16>
    %cst_21 = arith.constant dense<0.000000e+00> : vector<64x16xf32>
    %21 = tpu.matmul %19, %20, %cst_21 {dimension_numbers = #tpu.dot_dimension_numbers<[1], [0], [0], [1], [0, 0, 1, 1], [], []>} : vector<64x4xbf16>, vector<4x16xbf16>, vector<64x16xf32> -> vector<64x16xf32>
    %22 = arith.addf %16, %21 : vector<64x16xf32>
    %c0_22 = arith.constant 0 : index
    %c13 = arith.constant 13 : index
    %c0_23 = arith.constant 0 : index
    %23 = vector.load %arg5[%c0_22, %c13, %c0_23] : memref<2x48x16xf32, #tpu.memory_space<vmem>>, vector<2x32x4xf32>
    %24 = vector.shape_cast %23 : vector<2x32x4xf32> to vector<64x4xf32>
    %25 = arith.truncf %24 : vector<64x4xf32> to vector<64x4xbf16>
    %c24 = arith.constant 24 : index
    %c0_24 = arith.constant 0 : index
    %26 = vector.load %arg2[%c24, %c0_24] : memref<560x128xbf16, #tpu.memory_space<vmem>>, vector<4x16xbf16>
    %cst_25 = arith.constant dense<0.000000e+00> : vector<64x16xf32>
    %27 = tpu.matmul %25, %26, %cst_25 {dimension_numbers = #tpu.dot_dimension_numbers<[1], [0], [0], [1], [0, 0, 1, 1], [], []>} : vector<64x4xbf16>, vector<4x16xbf16>, vector<64x16xf32> -> vector<64x16xf32>
    %28 = arith.addf %22, %27 : vector<64x16xf32>
    %c0_26 = arith.constant 0 : index
    %c14 = arith.constant 14 : index
    %c0_27 = arith.constant 0 : index
    %29 = vector.load %arg5[%c0_26, %c14, %c0_27] : memref<2x48x16xf32, #tpu.memory_space<vmem>>, vector<2x32x4xf32>
    %30 = vector.shape_cast %29 : vector<2x32x4xf32> to vector<64x4xf32>
    %31 = arith.truncf %30 : vector<64x4xf32> to vector<64x4xbf16>
    %c32 = arith.constant 32 : index
    %c0_28 = arith.constant 0 : index
    %32 = vector.load %arg2[%c32, %c0_28] : memref<560x128xbf16, #tpu.memory_space<vmem>>, vector<4x16xbf16>
    %cst_29 = arith.constant dense<0.000000e+00> : vector<64x16xf32>
    %33 = tpu.matmul %31, %32, %cst_29 {dimension_numbers = #tpu.dot_dimension_numbers<[1], [0], [0], [1], [0, 0, 1, 1], [], []>} : vector<64x4xbf16>, vector<4x16xbf16>, vector<64x16xf32> -> vector<64x16xf32>
    %34 = arith.addf %28, %33 : vector<64x16xf32>
    %c0_30 = arith.constant 0 : index
    %c15 = arith.constant 15 : index
    %c0_31 = arith.constant 0 : index
    %35 = vector.load %arg5[%c0_30, %c15, %c0_31] : memref<2x48x16xf32, #tpu.memory_space<vmem>>, vector<2x32x4xf32>
    %36 = vector.shape_cast %35 : vector<2x32x4xf32> to vector<64x4xf32>
    %37 = arith.truncf %36 : vector<64x4xf32> to vector<64x4xbf16>
    %c40 = arith.constant 40 : index
    %c0_32 = arith.constant 0 : index
    %38 = vector.load %arg2[%c40, %c0_32] : memref<560x128xbf16, #tpu.memory_space<vmem>>, vector<4x16xbf16>
    %cst_33 = arith.constant dense<0.000000e+00> : vector<64x16xf32>
    %39 = tpu.matmul %37, %38, %cst_33 {dimension_numbers = #tpu.dot_dimension_numbers<[1], [0], [0], [1], [0, 0, 1, 1], [], []>} : vector<64x4xbf16>, vector<4x16xbf16>, vector<64x16xf32> -> vector<64x16xf32>
    %40 = arith.addf %34, %39 : vector<64x16xf32>
    %c0_34 = arith.constant 0 : index
    %c16_35 = arith.constant 16 : index
    %c0_36 = arith.constant 0 : index
    %41 = vector.load %arg5[%c0_34, %c16_35, %c0_36] : memref<2x48x16xf32, #tpu.memory_space<vmem>>, vector<2x32x4xf32>
    %42 = vector.shape_cast %41 : vector<2x32x4xf32> to vector<64x4xf32>
    %43 = arith.truncf %42 : vector<64x4xf32> to vector<64x4xbf16>
    %c48 = arith.constant 48 : index
    %c0_37 = arith.constant 0 : index
    %44 = vector.load %arg2[%c48, %c0_37] : memref<560x128xbf16, #tpu.memory_space<vmem>>, vector<4x16xbf16>
    %cst_38 = arith.constant dense<0.000000e+00> : vector<64x16xf32>
    %45 = tpu.matmul %43, %44, %cst_38 {dimension_numbers = #tpu.dot_dimension_numbers<[1], [0], [0], [1], [0, 0, 1, 1], [], []>} : vector<64x4xbf16>, vector<4x16xbf16>, vector<64x16xf32> -> vector<64x16xf32>
    %46 = arith.addf %40, %45 : vector<64x16xf32>
    %c0_39 = arith.constant 0 : index
    %c0_40 = arith.constant 0 : index
    %47 = vector.load %arg3[%c0_39, %c0_40] : memref<8x128xf32, #tpu.memory_space<vmem>>, vector<1x16xf32>
    %48 = vector.broadcast %47 : vector<1x16xf32> to vector<64x16xf32>
    %49 = arith.addf %46, %48 : vector<64x16xf32>
    %50 = vector.shape_cast %49 : vector<64x16xf32> to vector<2x32x16xf32>
    %cst_41 = arith.constant 0.000000e+00 : f32
    %51 = vector.broadcast %cst_41 : f32 to vector<2x32x16xf32>
    %52 = arith.maximumf %50, %51 : vector<2x32x16xf32>
    %c0_42 = arith.constant 0 : index
    %c16_43 = arith.constant 16 : index
    %c0_44 = arith.constant 0 : index
    %53 = vector.load %arg5[%c0_42, %c16_43, %c0_44] : memref<2x48x16xf32, #tpu.memory_space<vmem>>, vector<2x32x16xf32>
    tpu.vector_store %arg5[%c0_42, %c16_43, %c0_44], %52 {strides = array<i32>} : memref<2x48x16xf32, #tpu.memory_space<vmem>>, vector<2x32x16xf32>,
    %cst_45 = arith.constant 0.000000e+00 : f32
    %54 = vector.broadcast %cst_45 : f32 to vector<64x16xf32>
    %c0_46 = arith.constant 0 : index
    %c10_47 = arith.constant 10 : index
    %c0_48 = arith.constant 0 : index
    %55 = vector.load %arg5[%c0_46, %c10_47, %c0_48] : memref<2x48x16xf32, #tpu.memory_space<vmem>>, vector<2x32x16xf32>
    %56 = vector.shape_cast %55 : vector<2x32x16xf32> to vector<64x16xf32>
    %57 = arith.truncf %56 : vector<64x16xf32> to vector<64x16xbf16>
    %c56 = arith.constant 56 : index
    %c0_49 = arith.constant 0 : index
    %58 = vector.load %arg2[%c56, %c0_49] : memref<560x128xbf16, #tpu.memory_space<vmem>>, vector<16x16xbf16>
    %cst_50 = arith.constant dense<0.000000e+00> : vector<64x16xf32>
    %59 = tpu.matmul %57, %58, %cst_50 {dimension_numbers = #tpu.dot_dimension_numbers<[1], [0], [0], [1], [0, 0, 1, 1], [], []>} : vector<64x16xbf16>, vector<16x16xbf16>, vector<64x16xf32> -> vector<64x16xf32>
    %60 = arith.addf %54, %59 : vector<64x16xf32>
    %c0_51 = arith.constant 0 : index
    %c11_52 = arith.constant 11 : index
    %c0_53 = arith.constant 0 : index
    %61 = vector.load %arg5[%c0_51, %c11_52, %c0_53] : memref<2x48x16xf32, #tpu.memory_space<vmem>>, vector<2x32x16xf32>
    %62 = vector.shape_cast %61 : vector<2x32x16xf32> to vector<64x16xf32>
    %63 = arith.truncf %62 : vector<64x16xf32> to vector<64x16xbf16>
    %c72 = arith.constant 72 : index
    %c0_54 = arith.constant 0 : index
    %64 = vector.load %arg2[%c72, %c0_54] : memref<560x128xbf16, #tpu.memory_space<vmem>>, vector<16x16xbf16>
    %cst_55 = arith.constant dense<0.000000e+00> : vector<64x16xf32>
    %65 = tpu.matmul %63, %64, %cst_55 {dimension_numbers = #tpu.dot_dimension_numbers<[1], [0], [0], [1], [0, 0, 1, 1], [], []>} : vector<64x16xbf16>, vector<16x16xbf16>, vector<64x16xf32> -> vector<64x16xf32>
    %66 = arith.addf %60, %65 : vector<64x16xf32>
    %c0_56 = arith.constant 0 : index
    %c12_57 = arith.constant 12 : index
    %c0_58 = arith.constant 0 : index
    %67 = vector.load %arg5[%c0_56, %c12_57, %c0_58] : memref<2x48x16xf32, #tpu.memory_space<vmem>>, vector<2x32x16xf32>
    %68 = vector.shape_cast %67 : vector<2x32x16xf32> to vector<64x16xf32>
    %69 = arith.truncf %68 : vector<64x16xf32> to vector<64x16xbf16>
    %c88 = arith.constant 88 : index
    %c0_59 = arith.constant 0 : index
    %70 = vector.load %arg2[%c88, %c0_59] : memref<560x128xbf16, #tpu.memory_space<vmem>>, vector<16x16xbf16>
    %cst_60 = arith.constant dense<0.000000e+00> : vector<64x16xf32>
    %71 = tpu.matmul %69, %70, %cst_60 {dimension_numbers = #tpu.dot_dimension_numbers<[1], [0], [0], [1], [0, 0, 1, 1], [], []>} : vector<64x16xbf16>, vector<16x16xbf16>, vector<64x16xf32> -> vector<64x16xf32>
    %72 = arith.addf %66, %71 : vector<64x16xf32>
    %c0_61 = arith.constant 0 : index
    %c13_62 = arith.constant 13 : index
    %c0_63 = arith.constant 0 : index
    %73 = vector.load %arg5[%c0_61, %c13_62, %c0_63] : memref<2x48x16xf32, #tpu.memory_space<vmem>>, vector<2x32x16xf32>
    %74 = vector.shape_cast %73 : vector<2x32x16xf32> to vector<64x16xf32>
    %75 = arith.truncf %74 : vector<64x16xf32> to vector<64x16xbf16>
    %c104 = arith.constant 104 : index
    %c0_64 = arith.constant 0 : index
    %76 = vector.load %arg2[%c104, %c0_64] : memref<560x128xbf16, #tpu.memory_space<vmem>>, vector<16x16xbf16>
    %cst_65 = arith.constant dense<0.000000e+00> : vector<64x16xf32>
    %77 = tpu.matmul %75, %76, %cst_65 {dimension_numbers = #tpu.dot_dimension_numbers<[1], [0], [0], [1], [0, 0, 1, 1], [], []>} : vector<64x16xbf16>, vector<16x16xbf16>, vector<64x16xf32> -> vector<64x16xf32>
    %78 = arith.addf %72, %77 : vector<64x16xf32>
    %c0_66 = arith.constant 0 : index
    %c14_67 = arith.constant 14 : index
    %c0_68 = arith.constant 0 : index
    %79 = vector.load %arg5[%c0_66, %c14_67, %c0_68] : memref<2x48x16xf32, #tpu.memory_space<vmem>>, vector<2x32x16xf32>
    %80 = vector.shape_cast %79 : vector<2x32x16xf32> to vector<64x16xf32>
    %81 = arith.truncf %80 : vector<64x16xf32> to vector<64x16xbf16>
    %c120 = arith.constant 120 : index
    %c0_69 = arith.constant 0 : index
    %82 = vector.load %arg2[%c120, %c0_69] : memref<560x128xbf16, #tpu.memory_space<vmem>>, vector<16x16xbf16>
    %cst_70 = arith.constant dense<0.000000e+00> : vector<64x16xf32>
    %83 = tpu.matmul %81, %82, %cst_70 {dimension_numbers = #tpu.dot_dimension_numbers<[1], [0], [0], [1], [0, 0, 1, 1], [], []>} : vector<64x16xbf16>, vector<16x16xbf16>, vector<64x16xf32> -> vector<64x16xf32>
    %84 = arith.addf %78, %83 : vector<64x16xf32>
    %c0_71 = arith.constant 0 : index
    %c15_72 = arith.constant 15 : index
    %c0_73 = arith.constant 0 : index
    %85 = vector.load %arg5[%c0_71, %c15_72, %c0_73] : memref<2x48x16xf32, #tpu.memory_space<vmem>>, vector<2x32x16xf32>
    %86 = vector.shape_cast %85 : vector<2x32x16xf32> to vector<64x16xf32>
    %87 = arith.truncf %86 : vector<64x16xf32> to vector<64x16xbf16>
    %c136 = arith.constant 136 : index
    %c0_74 = arith.constant 0 : index
    %88 = vector.load %arg2[%c136, %c0_74] : memref<560x128xbf16, #tpu.memory_space<vmem>>, vector<16x16xbf16>
    %cst_75 = arith.constant dense<0.000000e+00> : vector<64x16xf32>
    %89 = tpu.matmul %87, %88, %cst_75 {dimension_numbers = #tpu.dot_dimension_numbers<[1], [0], [0], [1], [0, 0, 1, 1], [], []>} : vector<64x16xbf16>, vector<16x16xbf16>, vector<64x16xf32> -> vector<64x16xf32>
    %90 = arith.addf %84, %89 : vector<64x16xf32>
    %c0_76 = arith.constant 0 : index
    %c16_77 = arith.constant 16 : index
    %c0_78 = arith.constant 0 : index
    %91 = vector.load %arg5[%c0_76, %c16_77, %c0_78] : memref<2x48x16xf32, #tpu.memory_space<vmem>>, vector<2x32x16xf32>
    %92 = vector.shape_cast %91 : vector<2x32x16xf32> to vector<64x16xf32>
    %93 = arith.truncf %92 : vector<64x16xf32> to vector<64x16xbf16>
    %c152 = arith.constant 152 : index
    %c0_79 = arith.constant 0 : index
    %94 = vector.load %arg2[%c152, %c0_79] : memref<560x128xbf16, #tpu.memory_space<vmem>>, vector<16x16xbf16>
    %cst_80 = arith.constant dense<0.000000e+00> : vector<64x16xf32>
    %95 = tpu.matmul %93, %94, %cst_80 {dimension_numbers = #tpu.dot_dimension_numbers<[1], [0], [0], [1], [0, 0, 1, 1], [], []>} : vector<64x16xbf16>, vector<16x16xbf16>, vector<64x16xf32> -> vector<64x16xf32>
    %96 = arith.addf %90, %95 : vector<64x16xf32>
    %c1 = arith.constant 1 : index
    %c0_81 = arith.constant 0 : index
    %97 = vector.load %arg3[%c1, %c0_81] : memref<8x128xf32, #tpu.memory_space<vmem>>, vector<1x16xf32>
    %98 = vector.broadcast %97 : vector<1x16xf32> to vector<64x16xf32>
    %99 = arith.addf %96, %98 : vector<64x16xf32>
    %100 = vector.shape_cast %99 : vector<64x16xf32> to vector<2x32x16xf32>
    %cst_82 = arith.constant 0.000000e+00 : f32
    %101 = vector.broadcast %cst_82 : f32 to vector<2x32x16xf32>
    %102 = arith.maximumf %100, %101 : vector<2x32x16xf32>
    %103 = vector.shape_cast %2 : vector<2x32x4xf32> to vector<64x4xf32>
    %104 = arith.truncf %103 : vector<64x4xf32> to vector<64x4xbf16>
    %c168 = arith.constant 168 : index
    %c0_83 = arith.constant 0 : index
    %105 = vector.load %arg2[%c168, %c0_83] : memref<560x128xbf16, #tpu.memory_space<vmem>>, vector<4x16xbf16>
    %cst_84 = arith.constant dense<0.000000e+00> : vector<64x16xf32>
    %106 = tpu.matmul %104, %105, %cst_84 {dimension_numbers = #tpu.dot_dimension_numbers<[1], [0], [0], [1], [0, 0, 1, 1], [], []>} : vector<64x4xbf16>, vector<4x16xbf16>, vector<64x16xf32> -> vector<64x16xf32>
    %c2 = arith.constant 2 : index
    %c0_85 = arith.constant 0 : index
    %107 = vector.load %arg3[%c2, %c0_85] : memref<8x128xf32, #tpu.memory_space<vmem>>, vector<1x16xf32>
    %108 = vector.broadcast %107 : vector<1x16xf32> to vector<64x16xf32>
    %109 = arith.addf %106, %108 : vector<64x16xf32>
    %110 = vector.shape_cast %109 : vector<64x16xf32> to vector<2x32x16xf32>
    %111 = arith.addf %102, %110 : vector<2x32x16xf32>
    %cst_86 = arith.constant 0.000000e+00 : f32
    %112 = vector.broadcast %cst_86 : f32 to vector<2x32x16xf32>
    %113 = arith.maximumf %111, %112 : vector<2x32x16xf32>
    %c0_87 = arith.constant 0 : index
    %c16_88 = arith.constant 16 : index
    %c0_89 = arith.constant 0 : index
    %114 = vector.load %arg5[%c0_87, %c16_88, %c0_89] : memref<2x48x16xf32, #tpu.memory_space<vmem>>, vector<2x32x16xf32>
    tpu.vector_store %arg5[%c0_87, %c16_88, %c0_89], %113 {strides = array<i32>} : memref<2x48x16xf32, #tpu.memory_space<vmem>>, vector<2x32x16xf32>,
    %cst_90 = arith.constant 0.000000e+00 : f32
    %115 = vector.broadcast %cst_90 : f32 to vector<64x32xf32>
    %c0_91 = arith.constant 0 : index
    %c4 = arith.constant 4 : index
    %c0_92 = arith.constant 0 : index
    %116 = vector.load %arg5[%c0_91, %c4, %c0_92] : memref<2x48x16xf32, #tpu.memory_space<vmem>>, vector<2x32x16xf32>
    %117 = vector.shape_cast %116 : vector<2x32x16xf32> to vector<64x16xf32>
    %118 = arith.truncf %117 : vector<64x16xf32> to vector<64x16xbf16>
    %c176 = arith.constant 176 : index
    %c0_93 = arith.constant 0 : index
    %119 = vector.load %arg2[%c176, %c0_93] : memref<560x128xbf16, #tpu.memory_space<vmem>>, vector<16x32xbf16>
    %cst_94 = arith.constant dense<0.000000e+00> : vector<64x32xf32>
    %120 = tpu.matmul %118, %119, %cst_94 {dimension_numbers = #tpu.dot_dimension_numbers<[1], [0], [0], [1], [0, 0, 1, 1], [], []>} : vector<64x16xbf16>, vector<16x32xbf16>, vector<64x32xf32> -> vector<64x32xf32>
    %121 = arith.addf %115, %120 : vector<64x32xf32>
    %c0_95 = arith.constant 0 : index
    %c6 = arith.constant 6 : index
    %c0_96 = arith.constant 0 : index
    %122 = vector.load %arg5[%c0_95, %c6, %c0_96] : memref<2x48x16xf32, #tpu.memory_space<vmem>>, vector<2x32x16xf32>
    %123 = vector.shape_cast %122 : vector<2x32x16xf32> to vector<64x16xf32>
    %124 = arith.truncf %123 : vector<64x16xf32> to vector<64x16xbf16>
    %c192 = arith.constant 192 : index
    %c0_97 = arith.constant 0 : index
    %125 = vector.load %arg2[%c192, %c0_97] : memref<560x128xbf16, #tpu.memory_space<vmem>>, vector<16x32xbf16>
    %cst_98 = arith.constant dense<0.000000e+00> : vector<64x32xf32>
    %126 = tpu.matmul %124, %125, %cst_98 {dimension_numbers = #tpu.dot_dimension_numbers<[1], [0], [0], [1], [0, 0, 1, 1], [], []>} : vector<64x16xbf16>, vector<16x32xbf16>, vector<64x32xf32> -> vector<64x32xf32>
    %127 = arith.addf %121, %126 : vector<64x32xf32>
    %c0_99 = arith.constant 0 : index
    %c8_100 = arith.constant 8 : index
    %c0_101 = arith.constant 0 : index
    %128 = vector.load %arg5[%c0_99, %c8_100, %c0_101] : memref<2x48x16xf32, #tpu.memory_space<vmem>>, vector<2x32x16xf32>
    %129 = vector.shape_cast %128 : vector<2x32x16xf32> to vector<64x16xf32>
    %130 = arith.truncf %129 : vector<64x16xf32> to vector<64x16xbf16>
    %c208 = arith.constant 208 : index
    %c0_102 = arith.constant 0 : index
    %131 = vector.load %arg2[%c208, %c0_102] : memref<560x128xbf16, #tpu.memory_space<vmem>>, vector<16x32xbf16>
    %cst_103 = arith.constant dense<0.000000e+00> : vector<64x32xf32>
    %132 = tpu.matmul %130, %131, %cst_103 {dimension_numbers = #tpu.dot_dimension_numbers<[1], [0], [0], [1], [0, 0, 1, 1], [], []>} : vector<64x16xbf16>, vector<16x32xbf16>, vector<64x32xf32> -> vector<64x32xf32>
    %133 = arith.addf %127, %132 : vector<64x32xf32>
    %c0_104 = arith.constant 0 : index
    %c10_105 = arith.constant 10 : index
    %c0_106 = arith.constant 0 : index
    %134 = vector.load %arg5[%c0_104, %c10_105, %c0_106] : memref<2x48x16xf32, #tpu.memory_space<vmem>>, vector<2x32x16xf32>
    %135 = vector.shape_cast %134 : vector<2x32x16xf32> to vector<64x16xf32>
    %136 = arith.truncf %135 : vector<64x16xf32> to vector<64x16xbf16>
    %c224 = arith.constant 224 : index
    %c0_107 = arith.constant 0 : index
    %137 = vector.load %arg2[%c224, %c0_107] : memref<560x128xbf16, #tpu.memory_space<vmem>>, vector<16x32xbf16>
    %cst_108 = arith.constant dense<0.000000e+00> : vector<64x32xf32>
    %138 = tpu.matmul %136, %137, %cst_108 {dimension_numbers = #tpu.dot_dimension_numbers<[1], [0], [0], [1], [0, 0, 1, 1], [], []>} : vector<64x16xbf16>, vector<16x32xbf16>, vector<64x32xf32> -> vector<64x32xf32>
    %139 = arith.addf %133, %138 : vector<64x32xf32>
    %c0_109 = arith.constant 0 : index
    %c12_110 = arith.constant 12 : index
    %c0_111 = arith.constant 0 : index
    %140 = vector.load %arg5[%c0_109, %c12_110, %c0_111] : memref<2x48x16xf32, #tpu.memory_space<vmem>>, vector<2x32x16xf32>
    %141 = vector.shape_cast %140 : vector<2x32x16xf32> to vector<64x16xf32>
    %142 = arith.truncf %141 : vector<64x16xf32> to vector<64x16xbf16>
    %c240 = arith.constant 240 : index
    %c0_112 = arith.constant 0 : index
    %143 = vector.load %arg2[%c240, %c0_112] : memref<560x128xbf16, #tpu.memory_space<vmem>>, vector<16x32xbf16>
    %cst_113 = arith.constant dense<0.000000e+00> : vector<64x32xf32>
    %144 = tpu.matmul %142, %143, %cst_113 {dimension_numbers = #tpu.dot_dimension_numbers<[1], [0], [0], [1], [0, 0, 1, 1], [], []>} : vector<64x16xbf16>, vector<16x32xbf16>, vector<64x32xf32> -> vector<64x32xf32>
    %145 = arith.addf %139, %144 : vector<64x32xf32>
    %c0_114 = arith.constant 0 : index
    %c14_115 = arith.constant 14 : index
    %c0_116 = arith.constant 0 : index
    %146 = vector.load %arg5[%c0_114, %c14_115, %c0_116] : memref<2x48x16xf32, #tpu.memory_space<vmem>>, vector<2x32x16xf32>
    %147 = vector.shape_cast %146 : vector<2x32x16xf32> to vector<64x16xf32>
    %148 = arith.truncf %147 : vector<64x16xf32> to vector<64x16xbf16>
    %c256 = arith.constant 256 : index
    %c0_117 = arith.constant 0 : index
    %149 = vector.load %arg2[%c256, %c0_117] : memref<560x128xbf16, #tpu.memory_space<vmem>>, vector<16x32xbf16>
    %cst_118 = arith.constant dense<0.000000e+00> : vector<64x32xf32>
    %150 = tpu.matmul %148, %149, %cst_118 {dimension_numbers = #tpu.dot_dimension_numbers<[1], [0], [0], [1], [0, 0, 1, 1], [], []>} : vector<64x16xbf16>, vector<16x32xbf16>, vector<64x32xf32> -> vector<64x32xf32>
    %151 = arith.addf %145, %150 : vector<64x32xf32>
    %c0_119 = arith.constant 0 : index
    %c16_120 = arith.constant 16 : index
    %c0_121 = arith.constant 0 : index
    %152 = vector.load %arg5[%c0_119, %c16_120, %c0_121] : memref<2x48x16xf32, #tpu.memory_space<vmem>>, vector<2x32x16xf32>
    %153 = vector.shape_cast %152 : vector<2x32x16xf32> to vector<64x16xf32>
    %154 = arith.truncf %153 : vector<64x16xf32> to vector<64x16xbf16>
    %c272 = arith.constant 272 : index
    %c0_122 = arith.constant 0 : index
    %155 = vector.load %arg2[%c272, %c0_122] : memref<560x128xbf16, #tpu.memory_space<vmem>>, vector<16x32xbf16>
    %cst_123 = arith.constant dense<0.000000e+00> : vector<64x32xf32>
    %156 = tpu.matmul %154, %155, %cst_123 {dimension_numbers = #tpu.dot_dimension_numbers<[1], [0], [0], [1], [0, 0, 1, 1], [], []>} : vector<64x16xbf16>, vector<16x32xbf16>, vector<64x32xf32> -> vector<64x32xf32>
    %157 = arith.addf %151, %156 : vector<64x32xf32>
    %c3 = arith.constant 3 : index
    %c0_124 = arith.constant 0 : index
    %158 = vector.load %arg3[%c3, %c0_124] : memref<8x128xf32, #tpu.memory_space<vmem>>, vector<1x32xf32>
    %159 = vector.broadcast %158 : vector<1x32xf32> to vector<64x32xf32>
    %160 = arith.addf %157, %159 : vector<64x32xf32>
    %161 = vector.shape_cast %160 : vector<64x32xf32> to vector<2x32x32xf32>
    %cst_125 = arith.constant 0.000000e+00 : f32
    %162 = vector.broadcast %cst_125 : f32 to vector<2x32x32xf32>
    %163 = arith.maximumf %161, %162 : vector<2x32x32xf32>
    %cst_126 = arith.constant 0.000000e+00 : f32
    %164 = vector.broadcast %cst_126 : f32 to vector<2x32xf32>
    %165 = vector.extract_strided_slice %163 {offsets = [0, 19, 0], sizes = [2, 1, 32], strides = [1, 1, 1]} : vector<2x32x32xf32> to vector<2x1x32xf32>
    %166 = vector.shape_cast %165 : vector<2x1x32xf32> to vector<2x32xf32>
    %167 = arith.truncf %166 : vector<2x32xf32> to vector<2x32xbf16>
    %c288 = arith.constant 288 : index
    %c0_127 = arith.constant 0 : index
    %168 = vector.load %arg2[%c288, %c0_127] : memref<560x128xbf16, #tpu.memory_space<vmem>>, vector<32x32xbf16>
    %cst_128 = arith.constant dense<0.000000e+00> : vector<2x32xf32>
    %169 = tpu.matmul %167, %168, %cst_128 {dimension_numbers = #tpu.dot_dimension_numbers<[1], [0], [0], [1], [0, 0, 1, 1], [], []>} : vector<2x32xbf16>, vector<32x32xbf16>, vector<2x32xf32> -> vector<2x32xf32>
    %170 = arith.addf %164, %169 : vector<2x32xf32>
    %171 = vector.extract_strided_slice %163 {offsets = [0, 21, 0], sizes = [2, 1, 32], strides = [1, 1, 1]} : vector<2x32x32xf32> to vector<2x1x32xf32>
    %172 = vector.shape_cast %171 : vector<2x1x32xf32> to vector<2x32xf32>
    %173 = arith.truncf %172 : vector<2x32xf32> to vector<2x32xbf16>
    %c320 = arith.constant 320 : index
    %c0_129 = arith.constant 0 : index
    %174 = vector.load %arg2[%c320, %c0_129] : memref<560x128xbf16, #tpu.memory_space<vmem>>, vector<32x32xbf16>
    %cst_130 = arith.constant dense<0.000000e+00> : vector<2x32xf32>
    %175 = tpu.matmul %173, %174, %cst_130 {dimension_numbers = #tpu.dot_dimension_numbers<[1], [0], [0], [1], [0, 0, 1, 1], [], []>} : vector<2x32xbf16>, vector<32x32xbf16>, vector<2x32xf32> -> vector<2x32xf32>
    %176 = arith.addf %170, %175 : vector<2x32xf32>
    %177 = vector.extract_strided_slice %163 {offsets = [0, 23, 0], sizes = [2, 1, 32], strides = [1, 1, 1]} : vector<2x32x32xf32> to vector<2x1x32xf32>
    %178 = vector.shape_cast %177 : vector<2x1x32xf32> to vector<2x32xf32>
    %179 = arith.truncf %178 : vector<2x32xf32> to vector<2x32xbf16>
    %c352 = arith.constant 352 : index
    %c0_131 = arith.constant 0 : index
    %180 = vector.load %arg2[%c352, %c0_131] : memref<560x128xbf16, #tpu.memory_space<vmem>>, vector<32x32xbf16>
    %cst_132 = arith.constant dense<0.000000e+00> : vector<2x32xf32>
    %181 = tpu.matmul %179, %180, %cst_132 {dimension_numbers = #tpu.dot_dimension_numbers<[1], [0], [0], [1], [0, 0, 1, 1], [], []>} : vector<2x32xbf16>, vector<32x32xbf16>, vector<2x32xf32> -> vector<2x32xf32>
    %182 = arith.addf %176, %181 : vector<2x32xf32>
    %183 = vector.extract_strided_slice %163 {offsets = [0, 25, 0], sizes = [2, 1, 32], strides = [1, 1, 1]} : vector<2x32x32xf32> to vector<2x1x32xf32>
    %184 = vector.shape_cast %183 : vector<2x1x32xf32> to vector<2x32xf32>
    %185 = arith.truncf %184 : vector<2x32xf32> to vector<2x32xbf16>
    %c384 = arith.constant 384 : index
    %c0_133 = arith.constant 0 : index
    %186 = vector.load %arg2[%c384, %c0_133] : memref<560x128xbf16, #tpu.memory_space<vmem>>, vector<32x32xbf16>
    %cst_134 = arith.constant dense<0.000000e+00> : vector<2x32xf32>
    %187 = tpu.matmul %185, %186, %cst_134 {dimension_numbers = #tpu.dot_dimension_numbers<[1], [0], [0], [1], [0, 0, 1, 1], [], []>} : vector<2x32xbf16>, vector<32x32xbf16>, vector<2x32xf32> -> vector<2x32xf32>
    %188 = arith.addf %182, %187 : vector<2x32xf32>
    %189 = vector.extract_strided_slice %163 {offsets = [0, 27, 0], sizes = [2, 1, 32], strides = [1, 1, 1]} : vector<2x32x32xf32> to vector<2x1x32xf32>
    %190 = vector.shape_cast %189 : vector<2x1x32xf32> to vector<2x32xf32>
    %191 = arith.truncf %190 : vector<2x32xf32> to vector<2x32xbf16>
    %c416 = arith.constant 416 : index
    %c0_135 = arith.constant 0 : index
    %192 = vector.load %arg2[%c416, %c0_135] : memref<560x128xbf16, #tpu.memory_space<vmem>>, vector<32x32xbf16>
    %cst_136 = arith.constant dense<0.000000e+00> : vector<2x32xf32>
    %193 = tpu.matmul %191, %192, %cst_136 {dimension_numbers = #tpu.dot_dimension_numbers<[1], [0], [0], [1], [0, 0, 1, 1], [], []>} : vector<2x32xbf16>, vector<32x32xbf16>, vector<2x32xf32> -> vector<2x32xf32>
    %194 = arith.addf %188, %193 : vector<2x32xf32>
    %195 = vector.extract_strided_slice %163 {offsets = [0, 29, 0], sizes = [2, 1, 32], strides = [1, 1, 1]} : vector<2x32x32xf32> to vector<2x1x32xf32>
    %196 = vector.shape_cast %195 : vector<2x1x32xf32> to vector<2x32xf32>
    %197 = arith.truncf %196 : vector<2x32xf32> to vector<2x32xbf16>
    %c448 = arith.constant 448 : index
    %c0_137 = arith.constant 0 : index
    %198 = vector.load %arg2[%c448, %c0_137] : memref<560x128xbf16, #tpu.memory_space<vmem>>, vector<32x32xbf16>
    %cst_138 = arith.constant dense<0.000000e+00> : vector<2x32xf32>
    %199 = tpu.matmul %197, %198, %cst_138 {dimension_numbers = #tpu.dot_dimension_numbers<[1], [0], [0], [1], [0, 0, 1, 1], [], []>} : vector<2x32xbf16>, vector<32x32xbf16>, vector<2x32xf32> -> vector<2x32xf32>
    %200 = arith.addf %194, %199 : vector<2x32xf32>
    %201 = vector.extract_strided_slice %163 {offsets = [0, 31, 0], sizes = [2, 1, 32], strides = [1, 1, 1]} : vector<2x32x32xf32> to vector<2x1x32xf32>
    %202 = vector.shape_cast %201 : vector<2x1x32xf32> to vector<2x32xf32>
    %203 = arith.truncf %202 : vector<2x32xf32> to vector<2x32xbf16>
    %c480 = arith.constant 480 : index
    %c0_139 = arith.constant 0 : index
    %204 = vector.load %arg2[%c480, %c0_139] : memref<560x128xbf16, #tpu.memory_space<vmem>>, vector<32x32xbf16>
    %cst_140 = arith.constant dense<0.000000e+00> : vector<2x32xf32>
    %205 = tpu.matmul %203, %204, %cst_140 {dimension_numbers = #tpu.dot_dimension_numbers<[1], [0], [0], [1], [0, 0, 1, 1], [], []>} : vector<2x32xbf16>, vector<32x32xbf16>, vector<2x32xf32> -> vector<2x32xf32>
    %206 = arith.addf %200, %205 : vector<2x32xf32>
    %c4_141 = arith.constant 4 : index
    %c0_142 = arith.constant 0 : index
    %207 = vector.load %arg3[%c4_141, %c0_142] : memref<8x128xf32, #tpu.memory_space<vmem>>, vector<1x32xf32>
    %208 = vector.broadcast %207 : vector<1x32xf32> to vector<2x32xf32>
    %209 = arith.addf %206, %208 : vector<2x32xf32>
    %cst_143 = arith.constant 0.000000e+00 : f32
    %210 = vector.broadcast %cst_143 : f32 to vector<2x32xf32>
    %211 = arith.maximumf %209, %210 : vector<2x32xf32>
    %212 = vector.extract_strided_slice %113 {offsets = [0, 31, 0], sizes = [2, 1, 16], strides = [1, 1, 1]} : vector<2x32x16xf32> to vector<2x1x16xf32>
    %213 = vector.shape_cast %212 : vector<2x1x16xf32> to vector<2x16xf32>
    %214 = arith.truncf %213 : vector<2x16xf32> to vector<2x16xbf16>
    %c512 = arith.constant 512 : index
    %c0_144 = arith.constant 0 : index
    %215 = vector.load %arg2[%c512, %c0_144] : memref<560x128xbf16, #tpu.memory_space<vmem>>, vector<16x32xbf16>
    %cst_145 = arith.constant dense<0.000000e+00> : vector<2x32xf32>
    %216 = tpu.matmul %214, %215, %cst_145 {dimension_numbers = #tpu.dot_dimension_numbers<[1], [0], [0], [1], [0, 0, 1, 1], [], []>} : vector<2x16xbf16>, vector<16x32xbf16>, vector<2x32xf32> -> vector<2x32xf32>
    %c5 = arith.constant 5 : index
    %c0_146 = arith.constant 0 : index
    %217 = vector.load %arg3[%c5, %c0_146] : memref<8x128xf32, #tpu.memory_space<vmem>>, vector<1x32xf32>
    %218 = vector.broadcast %217 : vector<1x32xf32> to vector<2x32xf32>
    %219 = arith.addf %216, %218 : vector<2x32xf32>
    %220 = arith.addf %211, %219 : vector<2x32xf32>
    %cst_147 = arith.constant 0.000000e+00 : f32
    %221 = vector.broadcast %cst_147 : f32 to vector<2x32xf32>
    %222 = arith.maximumf %220, %221 : vector<2x32xf32>
    %223 = arith.truncf %222 : vector<2x32xf32> to vector<2x32xbf16>
    %c528 = arith.constant 528 : index
    %c0_148 = arith.constant 0 : index
    %224 = vector.load %arg2[%c528, %c0_148] : memref<560x128xbf16, #tpu.memory_space<vmem>>, vector<32x128xbf16>
    %cst_149 = arith.constant dense<0.000000e+00> : vector<2x128xf32>
    %225 = tpu.matmul %223, %224, %cst_149 {dimension_numbers = #tpu.dot_dimension_numbers<[1], [0], [0], [1], [0, 0, 1, 1], [], []>} : vector<2x32xbf16>, vector<32x128xbf16>, vector<2x128xf32> -> vector<2x128xf32>
    %c6_150 = arith.constant 6 : index
    %c0_151 = arith.constant 0 : index
    %226 = vector.load %arg3[%c6_150, %c0_151] : memref<8x128xf32, #tpu.memory_space<vmem>>, vector<1x128xf32>
    %227 = vector.broadcast %226 : vector<1x128xf32> to vector<2x128xf32>
    %228 = arith.addf %225, %227 : vector<2x128xf32>
    %cst_152 = arith.constant dense<0xFF800000> : vector<2xf32>
    %229 = vector.multi_reduction <maximumf>, %228, %cst_152 [1] : vector<2x128xf32> to vector<2xf32>
    %230 = vector.shape_cast %229 : vector<2xf32> to vector<2x1xf32>
    %231 = vector.broadcast %230 : vector<2x1xf32> to vector<2x128xf32>
    %232 = arith.subf %228, %231 : vector<2x128xf32>
    %233 = math.exp %232 : vector<2x128xf32>
    %cst_153 = arith.constant dense<0.000000e+00> : vector<2xf32>
    %234 = vector.multi_reduction <add>, %233, %cst_153 [1] : vector<2x128xf32> to vector<2xf32>
    %235 = vector.shape_cast %234 : vector<2xf32> to vector<2x1xf32>
    %236 = math.log %235 : vector<2x1xf32>
    %237 = arith.addf %236, %230 : vector<2x1xf32>
    %238 = vector.broadcast %237 : vector<2x1xf32> to vector<2x128xf32>
    %239 = arith.subf %228, %238 : vector<2x128xf32>
    %c0_154 = arith.constant 0 : index
    %c0_155 = arith.constant 0 : index
    %240 = vector.load %arg4[%c0_154, %c0_155] : memref<2x128xf32, #tpu.memory_space<vmem>>, vector<2x128xf32>
    tpu.vector_store %arg4[%c0_154, %c0_155], %239 {strides = array<i32>} : memref<2x128xf32, #tpu.memory_space<vmem>>, vector<2x128xf32>,
    return
  }
  func.func @transform_0(%arg0: i32) -> (i32, i32, i32) {
    %c0_i32 = arith.constant 0 : i32
    %c0_i32_0 = arith.constant 0 : i32
    %c0_i32_1 = arith.constant 0 : i32
    %c0_i32_2 = arith.constant 0 : i32
    return %c0_i32, %c0_i32_0, %c0_i32_1 : i32, i32, i32
  }
  func.func @transform_1(%arg0: i32) -> (i32, i32) {
    %c0_i32 = arith.constant 0 : i32
    %c0_i32_0 = arith.constant 0 : i32
    %c0_i32_1 = arith.constant 0 : i32
    return %c0_i32, %c0_i32_0 : i32, i32
  }
  func.func @transform_2(%arg0: i32) -> (i32, i32) {
    %c0_i32 = arith.constant 0 : i32
    %c0_i32_0 = arith.constant 0 : i32
    %c0_i32_1 = arith.constant 0 : i32
    return %c0_i32, %c0_i32_0 : i32, i32
  }
  func.func @transform_3(%arg0: i32) -> (i32, i32) {
    %c0_i32 = arith.constant 0 : i32
    %c0_i32_0 = arith.constant 0 : i32
    %c0_i32_1 = arith.constant 0 : i32
    return %c0_i32, %c0_i32_0 : i32, i32
  }
}

</mosaic_0001>

<bundles_post_ra>
// kernel: tpu_custom_call.1
= control target key start
LH: loop header
LB: loop body
LE: loop exit
PB: predicated region body
PF: predicated region fallthrough
CT: control target
= control target key end

     0   :  { %8 = vsyncpa [#allocation4], 0  ;;  %s2635_s0 = inlined_call_operand.vmem [shape: f32[2,32,4], index: 0, kind: input, shape index: {}]   ;;  %s2636_s1 = inlined_call_operand.hbm [shape: bf16[560,128], index: 1, kind: input, shape index: {}]   ;;  %s2637_s2 = inlined_call_operand.vmem [shape: f32[8,128], index: 2, kind: input, shape index: {}]   ;;  %s2638_s3 = inlined_call_operand.hbm [shape: f32[2,128], index: 3, kind: output, shape index: {}]  }
   0x1   :  { %9 = vsyncpa [#allocation5], 0  ;;  %s16_s14 = sshll.u32 %s2636_s1, 4  ;;  %s2207_s15 = smov [#allocation3]   ;;  %s17_s14 = int_to_ptr.hbm [resolvable:$true] %s16_s14 }
   0x2   :  { %s18_s16 = sshll.u32 %s2207_s15, 4  ;;  %s2208_s17 = smov 64   ;;  %s19_s16 = int_to_ptr.vmem [resolvable:$true] %s18_s16 }
   0x3   :  { %s2209_s18 = smov 4  }
   0x4   :  { %24 = dma.hbm_to_vmem [thread:$0]  %s17_s14, 4480, %s19_s16, [#allocation4], %s2208_s17, %s2208_s17, %s2209_s18  }
   0x5   :  { %2203 = dma.done.wait [#allocation4], 4480  }
   0x6   :  { %2204 = vsyncadd [#allocation4], 4294962816  ;;  %vm32_vm0 = vcmask 130048   ;;  %v2210_v0 = vmov 0.0   ;;  %vm92_vm1 = vcmask 1041408   ;;  %vm45_vm2 = vcmask 31744  }
   0x7   :  { %33 = vst.msk [vmem:[#allocation2] sm:$0xff] %vm32_vm0, %v2210_v0  ;;  %v79_v1 = vld [vmem:[#allocation3 + $0x4] sm:$0x3]  ;;  %v66_v2 = vld [vmem:[#allocation3] sm:$0x3]  ;;  %v2251_v10 = vld [vmem:[%s2635_s0 + $0x8] sm:$0xff] }
   0x8   :  { %34 = vst.msk [vmem:[#allocation2 + $0x8] sm:$0xff] %vm32_vm0, %v2210_v0  ;;  %v181_v3 = vld [vmem:[#allocation3 + $0x8] sm:$0x3]  ;;  %v94_v4 = vsel %vm92_vm1, %v79_v1, 0  ;;  %v138_v5 = vsel %vm92_vm1, %v66_v2, 0  ;;  %v2245_v8 = vld [vmem:[%s2635_s0] sm:$0xff] }
   0x9   :  { %35 = vst.msk [vmem:[#allocation2 + $0x30] sm:$0xff] %vm32_vm0, %v2210_v0  ;;  %v195_v6 = vsel %vm92_vm1, %v181_v3, 0  ;;  %v246_v7 = vld [vmem:[#allocation3 + $0xc] sm:$0x3]  ;;  %103 = vmatpush.bf16.msra.mxu0 %v94_v4  ;;  %147 = vmatpush.bf16.msra.mxu1 %v138_v5  ;;  %v441_v11 = vld [vmem:[#allocation3 + $0x18] sm:$0x3] }
   0xa   :  { %36 = vst.msk [vmem:[#allocation2 + $0x38] sm:$0xff] %vm32_vm0, %v2210_v0  ;;  %v260_v9 = vsel %vm92_vm1, %v246_v7, 0  ;;  %v2258_v12 = vld [vmem:[%s2635_s0 + $0x10] sm:$0xff]  ;;  %204 = vmatpush.bf16.msra.mxu2 %v195_v6  ;;  %v455_v13 = vsel %vm92_vm1, %v441_v11, 0  ;;  %v2268_v18 = vld [vmem:[%s2635_s0 + $0x18] sm:$0xff]  ;;  %v2275_v19 = vld [vmem:[%s2635_s0 + $0x20] sm:$0xff] }
   0xb   :  { %46 = vst.msk [vmem:[#allocation2 + $0x10] sm:$0xff] %vm45_vm2, %v2245_v8  ;;  %269 = vmatpush.bf16.msra.mxu3 %v260_v9  ;;  %v311_v14 = vld [vmem:[#allocation3 + $0x10] sm:$0x3]  ;;  %v376_v15 = vld [vmem:[#allocation3 + $0x14] sm:$0x3]  ;;  %v2280_v20 = vld [vmem:[%s2635_s0 + $0x28] sm:$0xff] }
   0xc   :  { %47 = vst.msk [vmem:[#allocation2 + $0x18] sm:$0xff] %vm45_vm2, %v2251_v10  ;;  %v325_v16 = vsel %vm92_vm1, %v311_v14, 0  ;;  %v390_v17 = vsel %vm92_vm1, %v376_v15, 0  ;;  %v2295_v33 = vld [vmem:[%s2635_s0 + $0x30] sm:$0xff]  ;;  %v2300_v34 = vld [vmem:[%s2635_s0 + $0x38] sm:$0xff]  ;;  %vm1525_vm3 = vcmask 1041409  }
   0xd   :  { %48 = vst.msk [vmem:[#allocation2 + $0x20] sm:$0xff] %vm45_vm2, %v2258_v12  ;;  %334 = vmatpush.bf16.msrb.mxu0 %v325_v16  ;;  %399 = vmatpush.bf16.msrb.mxu1 %v390_v17  ;;  %vm1540_vm4 = vcmask 261120   ;;  %s2211_s19 = smov [#allocation6]   ;;  %s1877_s22 = sshll.u32 %s2638_s3, 4  ;;  %s1878_s22 = int_to_ptr.hbm [resolvable:$true] %s1877_s22 }
   0xe   :  { %464 = vmatpush.bf16.msrb.mxu2 %v455_v13  ;;  %49 = vst.msk [vmem:[#allocation2 + $0x28] sm:$0xff] %vm45_vm2, %v2268_v18 }
   0xf   :  { %50 = vst.msk [vmem:[#allocation2 + $0x40] sm:$0xff] %vm45_vm2, %v2275_v19 }
  0x10   :  { %51 = vst.msk [vmem:[#allocation2 + $0x48] sm:$0xff] %vm45_vm2, %v2280_v20 }
  0x11   :  { %52 = vst.msk [vmem:[#allocation2 + $0x50] sm:$0xff] %vm45_vm2, %v2295_v33 }
  0x12   :  { %v67_v21 = vld [vmem:[#allocation2 + $0xb] sm:$0xff]  ;;  %53 = vst.msk [vmem:[#allocation2 + $0x58] sm:$0xff] %vm45_vm2, %v2300_v34 }
  0x13   :  { %v54_v22 = vld [vmem:[#allocation2 + $0xa] sm:$0xff]  ;;  %v68_v24 = vld [vmem:[#allocation2 + $0x13] sm:$0xff] }
  0x14   :  { %v169_v23 = vld [vmem:[#allocation2 + $0xc] sm:$0xff]  ;;  %v170_v26 = vld [vmem:[#allocation2 + $0x14] sm:$0xff]  ;;  %v75_v27 = vpack.c.bf16 %v68_v24, %v67_v21  ;;  %v171_v39 = vld [vmem:[#allocation2 + $0x1c] sm:$0xff] }
  0x15   :  { %v55_v25 = vld [vmem:[#allocation2 + $0x12] sm:$0xff]  ;;  %v177_v29 = vpack.c.bf16 %v170_v26, %v169_v23  ;;  %v69_v35 = vld [vmem:[#allocation2 + $0x1b] sm:$0xff]  ;;  %v70_v36 = vld [vmem:[#allocation2 + $0x23] sm:$0xff] }
  0x16   :  { %v62_v28 = vpack.c.bf16 %v55_v25, %v54_v22  ;;  %v234_v30 = vld [vmem:[#allocation2 + $0xd] sm:$0xff]  ;;  %v235_v31 = vld [vmem:[#allocation2 + $0x15] sm:$0xff]  ;;  %1887 = vmatmul.msk.bf16.vlgmr.msra.gmra.mxu0 %vm45_vm2, %v75_v27  ;;  %v57_v38 = vld [vmem:[#allocation2 + $0x22] sm:$0xff]  ;;  %v76_v43 = vpack.c.bf16 %v70_v36, %v69_v35 }
  0x17   :  { %v242_v32 = vpack.c.bf16 %v235_v31, %v234_v30  ;;  %1895 = vmatmul.msk.bf16.vlgmr.msra.gmra.mxu2 %vm45_vm2, %v177_v29  ;;  %v56_v37 = vld [vmem:[#allocation2 + $0x1a] sm:$0xff]  ;;  %v172_v40 = vld [vmem:[#allocation2 + $0x24] sm:$0xff]  ;;  %v299_v7 = vld [vmem:[#allocation2 + $0xe] sm:$0xff] }
  0x18   :  { %1891 = vmatmul.msk.bf16.vlgmr.msra.gmra.mxu1 %vm45_vm2, %v62_v28  ;;  %v236_v41 = vld [vmem:[#allocation2 + $0x1d] sm:$0xff]  ;;  %v237_v42 = vld [vmem:[#allocation2 + $0x25] sm:$0xff]  ;;  %v63_v44 = vpack.c.bf16 %v57_v38, %v56_v37  ;;  %v178_v45 = vpack.c.bf16 %v172_v40, %v171_v39  ;;  %v240_v1 = vld [vmem:[#allocation2 + $0x4d] sm:$0xff] }
  0x19   :  { %1899 = vmatmul.msk.bf16.vlgmr.msra.gmra.mxu3 %vm45_vm2, %v242_v32  ;;  %v243_v46 = vpack.c.bf16 %v237_v42, %v236_v41  ;;  %v71_v47 = vld [vmem:[#allocation2 + $0x3b] sm:$0xff]  ;;  %v72_v48 = vld [vmem:[#allocation2 + $0x43] sm:$0xff]  ;;  %v73_v59 = vld [vmem:[#allocation2 + $0x4b] sm:$0xff] }
  0x1a   :  { %v58_v49 = vld [vmem:[#allocation2 + $0x3a] sm:$0xff]  ;;  %v59_v50 = vld [vmem:[#allocation2 + $0x42] sm:$0xff]  ;;  %v77_v55 = vpack.c.bf16 %v72_v48, %v71_v47  ;;  %v60_v61 = vld [vmem:[#allocation2 + $0x4a] sm:$0xff] }
  0x1b   :  { %v173_v51 = vld [vmem:[#allocation2 + $0x3c] sm:$0xff]  ;;  %v174_v52 = vld [vmem:[#allocation2 + $0x44] sm:$0xff]  ;;  %v64_v56 = vpack.c.bf16 %v59_v50, %v58_v49  ;;  %v74_v60 = vld [vmem:[#allocation2 + $0x53] sm:$0xff] }
  0x1c   :  { %v238_v53 = vld [vmem:[#allocation2 + $0x3d] sm:$0xff]  ;;  %v239_v54 = vld [vmem:[#allocation2 + $0x45] sm:$0xff]  ;;  %v179_v57 = vpack.c.bf16 %v174_v52, %v173_v51  ;;  %v61_v62 = vld [vmem:[#allocation2 + $0x52] sm:$0xff]  ;;  %v78_v3 = vpack.c.bf16 %v74_v60, %v73_v59 }
  0x1d   :  { %v244_v58 = vpack.c.bf16 %v239_v54, %v238_v53  ;;  %v175_v63 = vld [vmem:[#allocation2 + $0x4c] sm:$0xff]  ;;  %v176_v0 = vld [vmem:[#allocation2 + $0x54] sm:$0xff]  ;;  %v65_v4 = vpack.c.bf16 %v61_v62, %v60_v61  ;;  %v301_v22 = vld [vmem:[#allocation2 + $0x1e] sm:$0xff] }
  0x1e   :  { %v241_v2 = vld [vmem:[#allocation2 + $0x55] sm:$0xff]  ;;  %v180_v5 = vpack.c.bf16 %v176_v0, %v175_v63  ;;  %v302_v23 = vld [vmem:[#allocation2 + $0x26] sm:$0xff]  ;;  %v303_v31 = vld [vmem:[#allocation2 + $0x3e] sm:$0xff] }
  0x1f   :  { %v245_v6 = vpack.c.bf16 %v241_v2, %v240_v1  ;;  %v300_v9 = vld [vmem:[#allocation2 + $0x16] sm:$0xff]  ;;  %v366_v24 = vld [vmem:[#allocation2 + $0x1f] sm:$0xff]  ;;  %v367_v25 = vld [vmem:[#allocation2 + $0x27] sm:$0xff]  ;;  %v308_v28 = vpack.c.bf16 %v302_v23, %v301_v22 }
  0x20   :  { %v364_v11 = vld [vmem:[#allocation2 + $0xf] sm:$0xff]  ;;  %v365_v13 = vld [vmem:[#allocation2 + $0x17] sm:$0xff]  ;;  %v307_v16 = vpack.c.bf16 %v300_v9, %v299_v7  ;;  %v431_v26 = vld [vmem:[#allocation2 + $0x20] sm:$0xff]  ;;  %v373_v29 = vpack.c.bf16 %v367_v25, %v366_v24 }
  0x21   :  { %v429_v14 = vld [vmem:[#allocation2 + $0x10] sm:$0xff]  ;;  %v430_v15 = vld [vmem:[#allocation2 + $0x18] sm:$0xff]  ;;  %v372_v17 = vpack.c.bf16 %v365_v13, %v364_v11  ;;  %v432_v27 = vld [vmem:[#allocation2 + $0x28] sm:$0xff] }
  0x22   :  { %v437_v21 = vpack.c.bf16 %v430_v15, %v429_v14  ;;  %v438_v30 = vpack.c.bf16 %v432_v27, %v431_v26  ;;  %v304_v32 = vld [vmem:[#allocation2 + $0x46] sm:$0xff]  ;;  %v305_v42 = vld [vmem:[#allocation2 + $0x4e] sm:$0xff]  ;;  %v436_v47 = vld [vmem:[#allocation2 + $0x58] sm:$0xff] }
  0x23   :  { %v368_v35 = vld [vmem:[#allocation2 + $0x3f] sm:$0xff]  ;;  %v369_v36 = vld [vmem:[#allocation2 + $0x47] sm:$0xff]  ;;  %v309_v39 = vpack.c.bf16 %v304_v32, %v303_v31 }
  0x24   :  { %v433_v37 = vld [vmem:[#allocation2 + $0x40] sm:$0xff]  ;;  %v434_v38 = vld [vmem:[#allocation2 + $0x48] sm:$0xff]  ;;  %v374_v40 = vpack.c.bf16 %v369_v36, %v368_v35 }
  0x25   :  { %v439_v41 = vpack.c.bf16 %v434_v38, %v433_v37  ;;  %v2109_v53 = vld [vmem:[#allocation3 + $0x24] sm:$0xff]  ;;  %v2110_v59 = vld [vmem:[#allocation3 + $0x2c] sm:$0xff]  ;;  %v2357_v35 = vld [vmem:[%s2637_s2] ss:$0 sm:$0xff] }
  0x26   :  { %1888 = vmatmul.msk.bf16.gmra.mxu0 %vm45_vm2, %v76_v43  ;;  %v306_v43 = vld [vmem:[#allocation2 + $0x56] sm:$0xff]  ;;  %573 = vmatpush.bf16.msrb.mxu3 %v2109_v53 }
  0x27   :  { %1896 = vmatmul.msk.bf16.gmra.mxu2 %vm45_vm2, %v178_v45  ;;  %v371_v45 = vld [vmem:[#allocation2 + $0x57] sm:$0xff]  ;;  %v310_v48 = vpack.c.bf16 %v306_v43, %v305_v42  ;;  %681 = vmatpush.bf16.msra.mxu1 %v2110_v59 }
  0x28   :  { %1892 = vmatmul.msk.bf16.gmra.mxu1 %vm45_vm2, %v63_v44  ;;  %v370_v44 = vld [vmem:[#allocation2 + $0x4f] sm:$0xff]  ;;  %v2112_v36 = vld [vmem:[#allocation3 + $0x3c] sm:$0xff] }
  0x29   :  { %1900 = vmatmul.msk.bf16.gmra.mxu3 %vm45_vm2, %v243_v46  ;;  %v435_v46 = vld [vmem:[#allocation2 + $0x50] sm:$0xff]  ;;  %v375_v49 = vpack.c.bf16 %v371_v45, %v370_v44 }
  0x2a   :  { %v440_v50 = vpack.c.bf16 %v436_v47, %v435_v46  ;;  %819 = vmatpush.bf16.msra.mxu3 %v2112_v36 }
  0x36   :  { %1889 = vmatmul.msk.bf16.gmra.mxu0 %vm45_vm2, %v77_v55 }
  0x37   :  { %1897 = vmatmul.msk.bf16.gmra.mxu2 %vm45_vm2, %v179_v57  ;;  %v2108_v57 = vld [vmem:[#allocation3 + $0x1c] sm:$0xff] }
  0x38   :  { %1893 = vmatmul.msk.bf16.gmra.mxu1 %vm45_vm2, %v64_v56  ;;  %620 = vmatpush.bf16.msra.mxu0 %v2108_v57 }
  0x39   :  { %1901 = vmatmul.msk.bf16.gmra.mxu3 %vm45_vm2, %v244_v58  ;;  %v2111_v58 = vld [vmem:[#allocation3 + $0x34] sm:$0xff] }
  0x3a   :  { %750 = vmatpush.bf16.msra.mxu2 %v2111_v58 }
  0x46   :  { %1890 = vmatmul.msk.bf16.gmra.mxu0 %vm45_vm2, %v78_v3 }
  0x47   :  { %1898 = vmatmul.msk.bf16.gmra.mxu2 %vm45_vm2, %v180_v5 }
  0x48   :  { %1894 = vmatmul.msk.bf16.gmra.mxu1 %vm45_vm2, %v65_v4 }
  0x49   :  { %1902 = vmatmul.msk.bf16.gmra.mxu3 %vm45_vm2, %v245_v6 }
  0x56   :  { %1903 = vmatmul.msk.bf16.vlgmr.msrb.gmra.mxu0 %vm45_vm2, %v307_v16 }
  0x57   :  { %1911 = vmatmul.msk.bf16.vlgmr.msrb.gmra.mxu2 %vm45_vm2, %v437_v21 }
  0x58   :  { %1907 = vmatmul.msk.bf16.vlgmr.msrb.gmra.mxu1 %vm45_vm2, %v372_v17 }
  0x66   :  { %1904 = vmatmul.msk.bf16.gmra.mxu0 %vm45_vm2, %v308_v28 }
  0x67   :  { %1912 = vmatmul.msk.bf16.gmra.mxu2 %vm45_vm2, %v438_v30 }
  0x68   :  { %1908 = vmatmul.msk.bf16.gmra.mxu1 %vm45_vm2, %v373_v29 }
  0x76   :  { %1905 = vmatmul.msk.bf16.gmra.mxu0 %vm45_vm2, %v309_v39 }
  0x77   :  { %1913 = vmatmul.msk.bf16.gmra.mxu2 %vm45_vm2, %v439_v41 }
  0x78   :  { %1909 = vmatmul.msk.bf16.gmra.mxu1 %vm45_vm2, %v374_v40 }
  0x86   :  { %1906 = vmatmul.msk.bf16.gmra.mxu0 %vm45_vm2, %v310_v48 }
  0x87   :  { %1914 = vmatmul.msk.bf16.gmra.mxu2 %vm45_vm2, %v440_v50  ;;  %v1009_v50 = vld [vmem:[#allocation3 + $0x54] sm:$0x3] }
  0x88   :  { %1910 = vmatmul.msk.bf16.gmra.mxu1 %vm45_vm2, %v375_v49  ;;  %v2113_v49 = vld [vmem:[#allocation3 + $0x44] sm:$0xff]  ;;  %v1025_v53 = vsel %vm92_vm1, %v1009_v50, 0 }
  0x89   :  { %888 = vmatpush.bf16.msrb.mxu0 %v2113_v49  ;;  %1034 = vmatpush.bf16.msrb.mxu2 %v1025_v53 }
  0x93   :  { %v105_v51 = vpop.f32.mrf.mxu0 }
  0x95   :  { %v149_v52 = vpop.f32.mrf.mxu1 }
  0x96   :  { %v150_v22 = vadd.f32 %v149_v52, %v105_v51  ;;  %v2114_v51 = vld [vmem:[#allocation3 + $0x4c] sm:$0xff] }
  0x97   :  { %957 = vmatpush.bf16.msrb.mxu1 %v2114_v51 }
  0x9a   :  { %v206_v54 = vpop.f32.mrf.mxu2 }
  0x9b   :  { %v107_v55 = vpop.f32.mrf.mxu0  ;;  %v226_v23 = vadd.f32 %v206_v54, %v150_v22 }
  0x9c   :  { %v271_v9 = vpop.f32.mrf.mxu3 }
  0x9d   :  { %v151_v56 = vpop.f32.mrf.mxu1  ;;  %v291_v25 = vadd.f32 %v271_v9, %v226_v23 }
  0x9e   :  { %v152_v28 = vadd.f32 %v151_v56, %v107_v55 }
  0xa2   :  { %v208_v60 = vpop.f32.mrf.mxu2 }
  0xa3   :  { %v110_v61 = vpop.f32.mrf.mxu0  ;;  %v227_v31 = vadd.f32 %v208_v60, %v152_v28 }
  0xa4   :  { %v273_v21 = vpop.f32.mrf.mxu3 }
  0xa5   :  { %v154_v62 = vpop.f32.mrf.mxu1  ;;  %v292_v38 = vadd.f32 %v273_v21, %v227_v31 }
  0xa6   :  { %v155_v42 = vadd.f32 %v154_v62, %v110_v61 }
  0xaa   :  { %v211_v63 = vpop.f32.mrf.mxu2 }
  0xab   :  { %v112_v0 = vpop.f32.mrf.mxu0  ;;  %v228_v45 = vadd.f32 %v211_v63, %v155_v42 }
  0xac   :  { %v276_v30 = vpop.f32.mrf.mxu3 }
  0xad   :  { %v156_v1 = vpop.f32.mrf.mxu1  ;;  %v293_v54 = vadd.f32 %v276_v30, %v228_v45 }
  0xae   :  { %v157_v58 = vadd.f32 %v156_v1, %v112_v0 }
  0xb2   :  { %v213_v2 = vpop.f32.mrf.mxu2 }
  0xb3   :  { %v2330_v3 = vpop.f32.mrf.mxu0  ;;  %v229_v61 = vadd.f32 %v213_v2, %v157_v58 }
  0xb4   :  { %v278_v47 = vpop.f32.mrf.mxu3 }
  0xb5   :  { %v2332_v4 = vpop.f32.mrf.mxu1  ;;  %v294_v22 = vadd.f32 %v278_v47, %v229_v61 }
  0xba   :  { %v2334_v5 = vpop.f32.mrf.mxu2 }
  0xbb   :  { %v2336_v6 = vpop.f32.mrf.mxu0 }
  0xbc   :  { %v281_v9 = vpop.f32.mrf.mxu3 }
  0xbd   :  { %v2338_v7 = vpop.f32.mrf.mxu1 }
  0xc2   :  { %v2340_v11 = vpop.f32.mrf.mxu2 }
  0xc3   :  { %v2342_v13 = vpop.f32.mrf.mxu0 }
  0xc4   :  { %v283_v47 = vpop.f32.mrf.mxu3 }
  0xc5   :  { %v2344_v14 = vpop.f32.mrf.mxu1 }
  0xca   :  { %v2346_v15 = vpop.f32.mrf.mxu2 }
  0xcb   :  { %v2348_v16 = vpop.f32.mrf.mxu0 }
  0xcd   :  { %v2350_v17 = vpop.f32.mrf.mxu1 }
  0xd2   :  { %v2352_v24 = vpop.f32.mrf.mxu2 }
  0xd3   :  { %v336_v26 = vpop.f32.mrf.mxu0 }
  0xd4   :  { %v356_v29 = vadd.f32 %v336_v26, %v291_v25 }
  0xd5   :  { %v401_v27 = vpop.f32.mrf.mxu1 }
  0xd6   :  { %v421_v32 = vadd.f32 %v401_v27, %v356_v29  ;;  %v160_v27 = vadd.f32 %v2332_v4, %v2330_v3 }
  0xd8   :  { %v230_v1 = vadd.f32 %v2334_v5, %v160_v27 }
  0xda   :  { %v466_v37 = vpop.f32.mrf.mxu2 }
  0xdb   :  { %v486_v39 = vadd.f32 %v466_v37, %v421_v32  ;;  %v338_v40 = vpop.f32.mrf.mxu0 }
  0xdc   :  { %v357_v44 = vadd.f32 %v338_v40, %v292_v38 }
  0xdd   :  { %v403_v41 = vpop.f32.mrf.mxu1  ;;  %v496_v43 = vadd.f32 %v2357_v35, %v486_v39 }
  0xde   :  { %v422_v48 = vadd.f32 %v403_v41, %v357_v44  ;;  %v295_v44 = vadd.f32 %v281_v9, %v230_v1 }
  0xdf   :  { %v504_v46 = vmax.f32 %v496_v43, 0.0 }
  0xe1   :  { %512 = vst.msk [vmem:[#allocation2 + $0x10] sm:$0xff] %vm32_vm0, %v504_v46 }
  0xe2   :  { %v468_v52 = vpop.f32.mrf.mxu2 }
  0xe3   :  { %v487_v55 = vadd.f32 %v468_v52, %v422_v48  ;;  %v341_v56 = vpop.f32.mrf.mxu0  ;;  %v162_v48 = vadd.f32 %v2338_v7, %v2336_v6  ;;  %v286_v7 = vpop.f32.mrf.mxu3 }
  0xe4   :  { %v358_v60 = vadd.f32 %v341_v56, %v293_v54 }
  0xe5   :  { %v406_v57 = vpop.f32.mrf.mxu1  ;;  %v497_v59 = vadd.f32 %v2357_v35, %v487_v55  ;;  %v231_v51 = vadd.f32 %v2340_v11, %v162_v48 }
  0xe6   :  { %v423_v63 = vadd.f32 %v406_v57, %v358_v60 }
  0xe7   :  { %v505_v62 = vmax.f32 %v497_v59, 0.0  ;;  %v296_v55 = vadd.f32 %v283_v47, %v231_v51  ;;  %v165_v59 = vadd.f32 %v2344_v14, %v2342_v13 }
  0xe8   :  { %v534_v2 = vld [vmem:[#allocation2 + $0xb] sm:$0xff] }
  0xe9   :  { %513 = vst.msk [vmem:[#allocation2 + $0x18] sm:$0xff] %vm32_vm0, %v505_v62  ;;  %v520_v30 = vld [vmem:[#allocation2 + $0xa] sm:$0xff]  ;;  %v232_v61 = vadd.f32 %v2346_v15, %v165_v59 }
  0xea   :  { %v471_v21 = vpop.f32.mrf.mxu2  ;;  %v642_v31 = vld [vmem:[#allocation2 + $0xc] sm:$0xff] }
  0xeb   :  { %v488_v23 = vadd.f32 %v471_v21, %v423_v63  ;;  %v343_v25 = vpop.f32.mrf.mxu0  ;;  %v711_v42 = vld [vmem:[#allocation2 + $0xd] sm:$0xff] }
  0xec   :  { %v359_v0 = vadd.f32 %v343_v25, %v294_v22 }
  0xed   :  { %v408_v26 = vpop.f32.mrf.mxu1  ;;  %v498_v28 = vadd.f32 %v2357_v35, %v488_v23 }
  0xee   :  { %v424_v38 = vadd.f32 %v408_v26, %v359_v0 }
  0xef   :  { %v506_v29 = vmax.f32 %v498_v28, 0.0 }
  0xf0   :  { %v535_v32 = vld [vmem:[#allocation2 + $0x13] sm:$0xff] }
  0xf1   :  { %v521_v36 = vld [vmem:[#allocation2 + $0x12] sm:$0xff]  ;;  %514 = vst.msk [vmem:[#allocation2 + $0x20] sm:$0xff] %vm32_vm0, %v506_v29  ;;  %v542_v39 = vpack.c.bf16 %v535_v32, %v534_v2  ;;  %v297_v29 = vadd.f32 %v286_v7, %v232_v61 }
  0xf2   :  { %v643_v37 = vld [vmem:[#allocation2 + $0x14] sm:$0xff]  ;;  %v528_v40 = vpack.c.bf16 %v521_v36, %v520_v30  ;;  %v473_v4 = vpop.f32.mrf.mxu2  ;;  %v167_v30 = vadd.f32 %v2350_v17, %v2348_v16 }
  0xf3   :  { %v650_v41 = vpack.c.bf16 %v643_v37, %v642_v31  ;;  %v712_v3 = vld [vmem:[#allocation2 + $0x15] sm:$0xff]  ;;  %v489_v45 = vadd.f32 %v473_v4, %v424_v38  ;;  %1919 = vmatmul.msk.bf16.vlgmr.msrb.gmra.mxu3 %vm32_vm0, %v542_v39  ;;  %v346_v5 = vpop.f32.mrf.mxu0  ;;  %v288_v39 = vpop.f32.mrf.mxu3 }
  0xf4   :  { %v719_v43 = vpack.c.bf16 %v712_v3, %v711_v42  ;;  %1927 = vmatmul.msk.bf16.vlgmr.msra.gmra.mxu0 %vm32_vm0, %v528_v40  ;;  %v360_v50 = vadd.f32 %v346_v5, %v295_v44  ;;  %v233_v37 = vadd.f32 %v2352_v24, %v167_v30 }
  0xf5   :  { %v411_v46 = vpop.f32.mrf.mxu1  ;;  %1935 = vmatmul.msk.bf16.vlgmr.msra.gmra.mxu1 %vm32_vm0, %v650_v41  ;;  %v499_v49 = vadd.f32 %v2357_v35, %v489_v45 }
  0xf6   :  { %1943 = vmatmul.msk.bf16.vlgmr.msra.gmra.mxu2 %vm32_vm0, %v719_v43  ;;  %v425_v53 = vadd.f32 %v411_v46, %v360_v50  ;;  %v298_v42 = vadd.f32 %v288_v39, %v233_v37 }
  0xf7   :  { %v507_v52 = vmax.f32 %v499_v49, 0.0 }
  0xf8   :  { %v536_v11 = vld [vmem:[#allocation2 + $0x1b] sm:$0xff] }
  0xf9   :  { %515 = vst.msk [vmem:[#allocation2 + $0x28] sm:$0xff] %vm32_vm0, %v507_v52  ;;  %v522_v63 = vld [vmem:[#allocation2 + $0x1a] sm:$0xff] }
  0xfa   :  { %v476_v54 = vpop.f32.mrf.mxu2  ;;  %v644_v9 = vld [vmem:[#allocation2 + $0x1c] sm:$0xff] }
  0xfb   :  { %v490_v56 = vadd.f32 %v476_v54, %v425_v53  ;;  %v348_v57 = vpop.f32.mrf.mxu0  ;;  %v713_v13 = vld [vmem:[#allocation2 + $0x1d] sm:$0xff] }
  0xfc   :  { %v361_v6 = vadd.f32 %v348_v57, %v296_v55 }
  0xfd   :  { %v413_v58 = vpop.f32.mrf.mxu1  ;;  %v500_v60 = vadd.f32 %v2357_v35, %v490_v56 }
  0xfe   :  { %v426_v25 = vadd.f32 %v413_v58, %v361_v6 }
  0xff   :  { %v508_v62 = vmax.f32 %v500_v60, 0.0 }
 0x100   :  { %v537_v21 = vld [vmem:[#allocation2 + $0x23] sm:$0xff] }
 0x101   :  { %v523_v22 = vld [vmem:[#allocation2 + $0x22] sm:$0xff]  ;;  %516 = vst.msk [vmem:[#allocation2 + $0x40] sm:$0xff] %vm32_vm0, %v508_v62  ;;  %v543_v26 = vpack.c.bf16 %v537_v21, %v536_v11 }
 0x102   :  { %v645_v23 = vld [vmem:[#allocation2 + $0x24] sm:$0xff]  ;;  %v529_v27 = vpack.c.bf16 %v523_v22, %v522_v63  ;;  %v478_v0 = vpop.f32.mrf.mxu2 }
 0x103   :  { %v651_v28 = vpack.c.bf16 %v645_v23, %v644_v9  ;;  %v714_v14 = vld [vmem:[#allocation2 + $0x25] sm:$0xff]  ;;  %v491_v2 = vadd.f32 %v478_v0, %v426_v25  ;;  %1920 = vmatmul.msk.bf16.gmra.mxu3 %vm32_vm0, %v543_v26  ;;  %v351_v15 = vpop.f32.mrf.mxu0  ;;  %v850_v26 = vld [vmem:[#allocation2 + $0x17] sm:$0xff] }
 0x104   :  { %v720_v1 = vpack.c.bf16 %v714_v14, %v713_v13  ;;  %1928 = vmatmul.msk.bf16.gmra.mxu0 %vm32_vm0, %v529_v27  ;;  %v362_v32 = vadd.f32 %v351_v15, %v297_v29  ;;  %v919_v27 = vld [vmem:[#allocation2 + $0x18] sm:$0xff]  ;;  %v849_v13 = vld [vmem:[#allocation2 + $0xf] sm:$0xff]  ;;  %v1005_v14 = vpack.c.bf16 %v2251_v10, %v2245_v8  ;;  %v783_v15 = vld [vmem:[#allocation2 + $0x26] sm:$0xff]  ;;  %v1006_v8 = vpack.c.bf16 %v2268_v18, %v2258_v12 }
 0x105   :  { %1936 = vmatmul.msk.bf16.gmra.mxu1 %vm32_vm0, %v651_v28  ;;  %v501_v31 = vadd.f32 %v2357_v35, %v491_v2  ;;  %v416_v36 = vpop.f32.mrf.mxu1  ;;  %v780_v28 = vld [vmem:[#allocation2 + $0xe] sm:$0xff]  ;;  %v1007_v12 = vpack.c.bf16 %v2280_v20, %v2275_v19  ;;  %v1008_v19 = vpack.c.bf16 %v2300_v34, %v2295_v33  ;;  %v2115_v34 = vld [vmem:[#allocation3 + $0x58] sm:$0xff] }
 0x106   :  { %1944 = vmatmul.msk.bf16.gmra.mxu2 %vm32_vm0, %v720_v1  ;;  %v427_v40 = vadd.f32 %v416_v36, %v362_v32  ;;  %v857_v1 = vpack.c.bf16 %v850_v26, %v849_v13  ;;  %v918_v29 = vld [vmem:[#allocation2 + $0x10] sm:$0xff]  ;;  %v852_v30 = vld [vmem:[#allocation2 + $0x27] sm:$0xff]  ;;  %v782_v32 = vld [vmem:[#allocation2 + $0x1e] sm:$0xff]  ;;  %1176 = vmatpush.bf16.msra.mxu0 %v2115_v34 }
 0x107   :  { %v509_v38 = vmax.f32 %v501_v31, 0.0  ;;  %v926_v2 = vpack.c.bf16 %v919_v27, %v918_v29  ;;  %v921_v31 = vld [vmem:[#allocation2 + $0x28] sm:$0xff]  ;;  %v851_v36 = vld [vmem:[#allocation2 + $0x1f] sm:$0xff]  ;;  %v789_v10 = vpack.c.bf16 %v783_v15, %v782_v32 }
 0x108   :  { %v538_v16 = vld [vmem:[#allocation2 + $0x3b] sm:$0xff]  ;;  %v858_v37 = vpack.c.bf16 %v852_v30, %v851_v36 }
 0x109   :  { %517 = vst.msk [vmem:[#allocation2 + $0x48] sm:$0xff] %vm32_vm0, %v509_v38  ;;  %v524_v17 = vld [vmem:[#allocation2 + $0x3a] sm:$0xff] }
 0x10a   :  { %v481_v41 = vpop.f32.mrf.mxu2  ;;  %v646_v5 = vld [vmem:[#allocation2 + $0x3c] sm:$0xff] }
 0x10b   :  { %v492_v3 = vadd.f32 %v481_v41, %v427_v40  ;;  %v353_v4 = vpop.f32.mrf.mxu0  ;;  %v715_v53 = vld [vmem:[#allocation2 + $0x3d] sm:$0xff] }
 0x10c   :  { %v363_v44 = vadd.f32 %v353_v4, %v298_v42  ;;  %v920_v38 = vld [vmem:[#allocation2 + $0x20] sm:$0xff] }
 0x10d   :  { %v502_v43 = vadd.f32 %v2357_v35, %v492_v3  ;;  %v418_v46 = vpop.f32.mrf.mxu1  ;;  %v927_v39 = vpack.c.bf16 %v921_v31, %v920_v38  ;;  %v784_v3 = vld [vmem:[#allocation2 + $0x3e] sm:$0xff] }
 0x10e   :  { %v428_v49 = vadd.f32 %v418_v46, %v363_v44  ;;  %v853_v4 = vld [vmem:[#allocation2 + $0x3f] sm:$0xff] }
 0x10f   :  { %v510_v45 = vmax.f32 %v502_v43, 0.0  ;;  %v922_v44 = vld [vmem:[#allocation2 + $0x40] sm:$0xff] }
 0x110   :  { %v539_v47 = vld [vmem:[#allocation2 + $0x43] sm:$0xff] }
 0x111   :  { %v525_v48 = vld [vmem:[#allocation2 + $0x42] sm:$0xff]  ;;  %518 = vst.msk [vmem:[#allocation2 + $0x50] sm:$0xff] %vm32_vm0, %v510_v45  ;;  %v544_v50 = vpack.c.bf16 %v539_v47, %v538_v16 }
 0x112   :  { %v647_v24 = vld [vmem:[#allocation2 + $0x44] sm:$0xff]  ;;  %v530_v51 = vpack.c.bf16 %v525_v48, %v524_v17  ;;  %v483_v55 = vpop.f32.mrf.mxu2 }
 0x113   :  { %v652_v52 = vpack.c.bf16 %v647_v24, %v646_v5  ;;  %v716_v54 = vld [vmem:[#allocation2 + $0x45] sm:$0xff]  ;;  %v493_v57 = vadd.f32 %v483_v55, %v428_v49  ;;  %1921 = vmatmul.msk.bf16.gmra.mxu3 %vm32_vm0, %v544_v50 }
 0x114   :  { %v721_v56 = vpack.c.bf16 %v716_v54, %v715_v53  ;;  %1929 = vmatmul.msk.bf16.gmra.mxu0 %vm32_vm0, %v530_v51  ;;  %v785_v40 = vld [vmem:[#allocation2 + $0x46] sm:$0xff] }
 0x115   :  { %1937 = vmatmul.msk.bf16.gmra.mxu1 %vm32_vm0, %v652_v52  ;;  %v503_v58 = vadd.f32 %v2357_v35, %v493_v57  ;;  %v781_v35 = vld [vmem:[#allocation2 + $0x16] sm:$0xff]  ;;  %v854_v41 = vld [vmem:[#allocation2 + $0x47] sm:$0xff]  ;;  %v790_v18 = vpack.c.bf16 %v785_v40, %v784_v3 }
 0x116   :  { %1945 = vmatmul.msk.bf16.gmra.mxu2 %vm32_vm0, %v721_v56  ;;  %v788_v0 = vpack.c.bf16 %v781_v35, %v780_v28  ;;  %v923_v42 = vld [vmem:[#allocation2 + $0x48] sm:$0xff]  ;;  %v859_v43 = vpack.c.bf16 %v854_v41, %v853_v4  ;;  %v2116_v52 = vld [vmem:[#allocation3 + $0x60] sm:$0xff] }
 0x117   :  { %v511_v59 = vmax.f32 %v503_v58, 0.0  ;;  %v928_v45 = vpack.c.bf16 %v923_v42, %v922_v44  ;;  %1133 = vmatpush.bf16.msrb.mxu3 %v2116_v52  ;;  %v2117_v56 = vld [vmem:[#allocation3 + $0x68] sm:$0xff]  ;;  %v2467_v4 = vld [vmem:[%s2637_s2 + $0x1] ss:$0 sm:$0xff] }
 0x118   :  { %v540_v60 = vld [vmem:[#allocation2 + $0x4b] sm:$0xff]  ;;  %1233 = vmatpush.bf16.msra.mxu1 %v2117_v56  ;;  %v2120_v34 = vld [vmem:[#allocation3 + $0x80] sm:$0xff] }
 0x119   :  { %519 = vst.msk [vmem:[#allocation2 + $0x58] sm:$0xff] %vm32_vm0, %v511_v59  ;;  %v526_v6 = vld [vmem:[#allocation2 + $0x4a] sm:$0xff] }
 0x11a   :  { %v648_v7 = vld [vmem:[#allocation2 + $0x4c] sm:$0xff] }
 0x11b   :  { %v717_v22 = vld [vmem:[#allocation2 + $0x4d] sm:$0xff] }
 0x11c   :  { %v786_v46 = vld [vmem:[#allocation2 + $0x4e] sm:$0xff] }
 0x11d   :  { %v855_v47 = vld [vmem:[#allocation2 + $0x4f] sm:$0xff] }
 0x11e   :  { %v924_v24 = vld [vmem:[#allocation2 + $0x50] sm:$0xff]  ;;  %v2121_v56 = vld [vmem:[#allocation3 + $0x88] sm:$0xff] }
 0x120   :  { %v541_v61 = vld [vmem:[#allocation2 + $0x53] sm:$0xff] }
 0x121   :  { %v527_v62 = vld [vmem:[#allocation2 + $0x52] sm:$0xff]  ;;  %v545_v63 = vpack.c.bf16 %v541_v61, %v540_v60 }
 0x122   :  { %v649_v11 = vld [vmem:[#allocation2 + $0x54] sm:$0xff]  ;;  %v531_v9 = vpack.c.bf16 %v527_v62, %v526_v6 }
 0x123   :  { %v653_v21 = vpack.c.bf16 %v649_v11, %v648_v7  ;;  %v718_v23 = vld [vmem:[#allocation2 + $0x55] sm:$0xff]  ;;  %1922 = vmatmul.msk.bf16.gmra.mxu3 %vm32_vm0, %v545_v63 }
 0x124   :  { %v722_v25 = vpack.c.bf16 %v718_v23, %v717_v22  ;;  %1930 = vmatmul.msk.bf16.gmra.mxu0 %vm32_vm0, %v531_v9  ;;  %v787_v16 = vld [vmem:[#allocation2 + $0x56] sm:$0xff] }
 0x125   :  { %1938 = vmatmul.msk.bf16.gmra.mxu1 %vm32_vm0, %v653_v21  ;;  %v856_v17 = vld [vmem:[#allocation2 + $0x57] sm:$0xff]  ;;  %v791_v20 = vpack.c.bf16 %v787_v16, %v786_v46 }
 0x126   :  { %1946 = vmatmul.msk.bf16.gmra.mxu2 %vm32_vm0, %v722_v25  ;;  %v925_v5 = vld [vmem:[#allocation2 + $0x58] sm:$0xff]  ;;  %v860_v48 = vpack.c.bf16 %v856_v17, %v855_v47 }
 0x127   :  { %v929_v49 = vpack.c.bf16 %v925_v5, %v924_v24 }
 0x133   :  { %1951 = vmatmul.msk.bf16.vlgmr.msra.gmra.mxu3 %vm32_vm0, %v788_v0 }
 0x134   :  { %1959 = vmatmul.msk.bf16.vlgmr.msrb.gmra.mxu0 %vm32_vm0, %v857_v1 }
 0x135   :  { %1967 = vmatmul.msk.bf16.vlgmr.msrb.gmra.mxu1 %vm32_vm0, %v926_v2  ;;  %1416 = vmatpush.bf16.msrb.mxu0 %v2120_v34 }
 0x136   :  { %1971 = vmatmul.msk.bf16.vlgmr.msrb.gmra.mxu2 %vm45_vm2, %v1005_v14  ;;  %1477 = vmatpush.bf16.msrb.mxu1 %v2121_v56 }
 0x143   :  { %1952 = vmatmul.msk.bf16.gmra.mxu3 %vm32_vm0, %v789_v10 }
 0x144   :  { %1960 = vmatmul.msk.bf16.gmra.mxu0 %vm32_vm0, %v858_v37 }
 0x145   :  { %1968 = vmatmul.msk.bf16.gmra.mxu1 %vm32_vm0, %v927_v39 }
 0x146   :  { %1972 = vmatmul.msk.bf16.gmra.mxu2 %vm45_vm2, %v1006_v8  ;;  %v2118_v8 = vld [vmem:[#allocation3 + $0x70] sm:$0xff] }
 0x147   :  { %1294 = vmatpush.bf16.msra.mxu2 %v2118_v8  ;;  %v1194_v8 = vld [vmem:[#allocation2 + $0x8] sm:$0xff] }
 0x153   :  { %1953 = vmatmul.msk.bf16.gmra.mxu3 %vm32_vm0, %v790_v18 }
 0x154   :  { %1961 = vmatmul.msk.bf16.gmra.mxu0 %vm32_vm0, %v859_v43 }
 0x155   :  { %1969 = vmatmul.msk.bf16.gmra.mxu1 %vm32_vm0, %v928_v45 }
 0x156   :  { %1973 = vmatmul.msk.bf16.gmra.mxu2 %vm45_vm2, %v1007_v12  ;;  %v2472_v12 = vld [vmem:[%s2637_s2 + $0x2] ss:$0 sm:$0xff] }
 0x163   :  { %1954 = vmatmul.msk.bf16.gmra.mxu3 %vm32_vm0, %v791_v20 }
 0x164   :  { %1962 = vmatmul.msk.bf16.gmra.mxu0 %vm32_vm0, %v860_v48 }
 0x165   :  { %1970 = vmatmul.msk.bf16.gmra.mxu1 %vm32_vm0, %v929_v49 }
 0x166   :  { %1974 = vmatmul.msk.bf16.gmra.mxu2 %vm45_vm2, %v1008_v19 }
 0x171   :  { %v622_v50 = vpop.f32.mrf.mxu0 }
 0x172   :  { %v683_v51 = vpop.f32.mrf.mxu1 }
 0x176   :  { %v575_v53 = vpop.f32.mrf.mxu3 }
 0x177   :  { %v623_v2 = vadd.f32 %v622_v50, %v575_v53 }
 0x179   :  { %v752_v54 = vpop.f32.mrf.mxu2  ;;  %v624_v55 = vpop.f32.mrf.mxu0  ;;  %v703_v32 = vadd.f32 %v683_v51, %v623_v2  ;;  %v2119_v51 = vld [vmem:[#allocation3 + $0x78] sm:$0xff] }
 0x17a   :  { %v685_v33 = vpop.f32.mrf.mxu1  ;;  %1355 = vmatpush.bf16.msra.mxu3 %v2119_v51 }
 0x17b   :  { %v772_v10 = vadd.f32 %v752_v54, %v703_v32 }
 0x17e   :  { %v577_v57 = vpop.f32.mrf.mxu3 }
 0x17f   :  { %v625_v37 = vadd.f32 %v624_v55, %v577_v57 }
 0x181   :  { %v754_v58 = vpop.f32.mrf.mxu2  ;;  %v627_v59 = vpop.f32.mrf.mxu0  ;;  %v704_v42 = vadd.f32 %v685_v33, %v625_v37 }
 0x182   :  { %v688_v60 = vpop.f32.mrf.mxu1 }
 0x183   :  { %v773_v44 = vadd.f32 %v754_v58, %v704_v42 }
 0x186   :  { %v580_v6 = vpop.f32.mrf.mxu3 }
 0x187   :  { %v628_v45 = vadd.f32 %v627_v59, %v580_v6 }
 0x189   :  { %v757_v7 = vpop.f32.mrf.mxu2  ;;  %v629_v61 = vpop.f32.mrf.mxu0  ;;  %v705_v48 = vadd.f32 %v688_v60, %v628_v45 }
 0x18a   :  { %v2428_v62 = vpop.f32.mrf.mxu1 }
 0x18b   :  { %v774_v55 = vadd.f32 %v757_v7, %v705_v48 }
 0x18e   :  { %v582_v11 = vpop.f32.mrf.mxu3 }
 0x18f   :  { %v630_v54 = vadd.f32 %v629_v61, %v582_v11  ;;  %v1094_v11 = vld [vmem:[#allocation2 + $0x6] sm:$0xff] }
 0x191   :  { %v2430_v63 = vpop.f32.mrf.mxu2  ;;  %v2432_v9 = vpop.f32.mrf.mxu0  ;;  %v706_v2 = vadd.f32 %v2428_v62, %v630_v54 }
 0x192   :  { %v2434_v21 = vpop.f32.mrf.mxu1 }
 0x196   :  { %v2436_v22 = vpop.f32.mrf.mxu3 }
 0x199   :  { %v2438_v23 = vpop.f32.mrf.mxu2  ;;  %v2440_v25 = vpop.f32.mrf.mxu0 }
 0x19a   :  { %v2442_v35 = vpop.f32.mrf.mxu1 }
 0x19e   :  { %v2444_v26 = vpop.f32.mrf.mxu3 }
 0x1a1   :  { %v2446_v27 = vpop.f32.mrf.mxu2  ;;  %v2448_v28 = vpop.f32.mrf.mxu0 }
 0x1a2   :  { %v2450_v13 = vpop.f32.mrf.mxu1 }
 0x1a6   :  { %v2452_v14 = vpop.f32.mrf.mxu3 }
 0x1a9   :  { %v2454_v0 = vpop.f32.mrf.mxu2  ;;  %v2456_v1 = vpop.f32.mrf.mxu0 }
 0x1aa   :  { %v2458_v29 = vpop.f32.mrf.mxu1 }
 0x1ae   :  { %v2460_v15 = vpop.f32.mrf.mxu3 }
 0x1b1   :  { %v2462_v30 = vpop.f32.mrf.mxu2  ;;  %v890_v31 = vpop.f32.mrf.mxu0 }
 0x1b2   :  { %v959_v36 = vpop.f32.mrf.mxu1 }
 0x1b6   :  { %v821_v38 = vpop.f32.mrf.mxu3 }
 0x1b7   :  { %v841_v39 = vadd.f32 %v821_v38, %v772_v10  ;;  %v775_v38 = vadd.f32 %v2430_v63, %v706_v2 }
 0x1b9   :  { %v1036_v40 = vpop.f32.mrf.mxu2  ;;  %v892_v41 = vpop.f32.mrf.mxu0  ;;  %v910_v3 = vadd.f32 %v890_v31, %v841_v39  ;;  %v633_v39 = vadd.f32 %v2432_v9, %v2436_v22 }
 0x1ba   :  { %v961_v18 = vpop.f32.mrf.mxu1  ;;  %v1037_v17 = vadd.f32 %v2472_v12, %v1036_v40 }
 0x1bb   :  { %v979_v43 = vadd.f32 %v959_v36, %v910_v3  ;;  %v1080_v36 = vld [vmem:[#allocation2 + $0x4] sm:$0xff] }
 0x1bd   :  { %v989_v16 = vadd.f32 %v2467_v4, %v979_v43 }
 0x1be   :  { %v823_v5 = vpop.f32.mrf.mxu3 }
 0x1bf   :  { %v997_v46 = vmax.f32 %v989_v16, 0.0  ;;  %v842_v47 = vadd.f32 %v823_v5, %v773_v44  ;;  %v707_v16 = vadd.f32 %v2434_v21, %v633_v39 }
 0x1c1   :  { %v1038_v19 = vpop.f32.mrf.mxu2  ;;  %v895_v20 = vpop.f32.mrf.mxu0  ;;  %v1056_v24 = vadd.f32 %v1037_v17, %v997_v46  ;;  %v911_v49 = vadd.f32 %v892_v41, %v842_v47 }
 0x1c2   :  { %v964_v50 = vpop.f32.mrf.mxu1  ;;  %v1039_v59 = vadd.f32 %v2472_v12, %v1038_v19 }
 0x1c3   :  { %v1064_v52 = vmax.f32 %v1056_v24, 0.0  ;;  %v980_v53 = vadd.f32 %v961_v18, %v911_v49 }
 0x1c5   :  { %1072 = vst.msk [vmem:[#allocation2 + $0x10] sm:$0xff] %vm32_vm0, %v1064_v52  ;;  %v990_v33 = vadd.f32 %v2467_v4, %v980_v53 }
 0x1c6   :  { %v826_v57 = vpop.f32.mrf.mxu3 }
 0x1c7   :  { %v998_v58 = vmax.f32 %v990_v33, 0.0  ;;  %v843_v60 = vadd.f32 %v826_v57, %v774_v55 }
 0x1c9   :  { %v1041_v6 = vpop.f32.mrf.mxu2  ;;  %v897_v31 = vpop.f32.mrf.mxu0  ;;  %v1057_v32 = vadd.f32 %v1039_v59, %v998_v58  ;;  %v912_v61 = vadd.f32 %v895_v20, %v843_v60  ;;  %v635_v20 = vadd.f32 %v2440_v25, %v2444_v26  ;;  %v638_v60 = vadd.f32 %v2448_v28, %v2452_v14 }
 0x1ca   :  { %v966_v7 = vpop.f32.mrf.mxu1  ;;  %v1042_v40 = vadd.f32 %v2472_v12, %v1041_v6 }
 0x1cb   :  { %v1065_v10 = vmax.f32 %v1057_v32, 0.0  ;;  %v981_v37 = vadd.f32 %v964_v50, %v912_v61  ;;  %v776_v50 = vadd.f32 %v2438_v23, %v707_v16  ;;  %v708_v25 = vadd.f32 %v2442_v35, %v635_v20 }
 0x1cc   :  { %v2484_v41 = vld [vmem:[#allocation2 + $0xe] sm:$0xff] }
 0x1cd   :  { %v2486_v42 = vld [vmem:[#allocation2 + $0xc] sm:$0xff]  ;;  %1073 = vst.msk [vmem:[#allocation2 + $0x18] sm:$0xff] %vm32_vm0, %v1065_v10  ;;  %v991_v3 = vadd.f32 %v2467_v4, %v981_v37  ;;  %v1102_v18 = vpack.c.bf16 %v2484_v41, %v1094_v11  ;;  %v777_v59 = vadd.f32 %v2446_v27, %v708_v25 }
 0x1ce   :  { %v2488_v62 = vld [vmem:[#allocation2 + $0x10] sm:$0xff]  ;;  %v1088_v43 = vpack.c.bf16 %v2486_v42, %v1080_v36  ;;  %v828_v44 = vpop.f32.mrf.mxu3 }
 0x1cf   :  { %v1202_v63 = vpack.c.bf16 %v2488_v62, %v1194_v8  ;;  %v999_v9 = vmax.f32 %v991_v3, 0.0  ;;  %v844_v22 = vadd.f32 %v828_v44, %v775_v38  ;;  %1979 = vmatmul.msk.bf16.vlgmr.msrb.gmra.mxu3 %vm32_vm0, %v1102_v18  ;;  %v1255_v24 = vld [vmem:[#allocation2 + $0xa] sm:$0xff]  ;;  %v709_v38 = vadd.f32 %v2450_v13, %v638_v60 }
 0x1d0   :  { %1987 = vmatmul.msk.bf16.vlgmr.msra.gmra.mxu0 %vm32_vm0, %v1088_v43  ;;  %v640_v43 = vadd.f32 %v2456_v1, %v2460_v15 }
 0x1d1   :  { %v1043_v45 = vpop.f32.mrf.mxu2  ;;  %1995 = vmatmul.msk.bf16.vlgmr.msra.gmra.mxu1 %vm32_vm0, %v1202_v63  ;;  %v1058_v17 = vadd.f32 %v1042_v40, %v999_v9  ;;  %v913_v5 = vadd.f32 %v897_v31, %v844_v22  ;;  %v900_v46 = vpop.f32.mrf.mxu0  ;;  %v778_v9 = vadd.f32 %v2454_v0, %v709_v38  ;;  %v1098_v0 = vld [vmem:[#allocation2 + $0x36] sm:$0xff] }
 0x1d2   :  { %v969_v48 = vpop.f32.mrf.mxu1  ;;  %v1044_v54 = vadd.f32 %v2472_v12, %v1043_v45 }
 0x1d3   :  { %v1066_v47 = vmax.f32 %v1058_v17, 0.0  ;;  %v982_v19 = vadd.f32 %v966_v7, %v913_v5 }
 0x1d4   :  { %v1256_v49 = vld [vmem:[#allocation2 + $0x12] sm:$0xff] }
 0x1d5   :  { %1074 = vst.msk [vmem:[#allocation2 + $0x20] sm:$0xff] %vm32_vm0, %v1066_v47  ;;  %v992_v51 = vadd.f32 %v2467_v4, %v982_v19  ;;  %v1263_v52 = vpack.c.bf16 %v1256_v49, %v1255_v24  ;;  %v2509_v57 = vld [vmem:[#allocation2 + $0x16] sm:$0xff]  ;;  %v710_v47 = vadd.f32 %v2458_v29, %v640_v43 }
 0x1d6   :  { %v831_v53 = vpop.f32.mrf.mxu3  ;;  %v2511_v58 = vld [vmem:[#allocation2 + $0x14] sm:$0xff] }
 0x1d7   :  { %v1000_v21 = vmax.f32 %v992_v51, 0.0  ;;  %v845_v55 = vadd.f32 %v831_v53, %v776_v50  ;;  %2003 = vmatmul.msk.bf16.vlgmr.msra.gmra.mxu2 %vm32_vm0, %v1263_v52  ;;  %v2530_v14 = vld [vmem:[#allocation2 + $0x18] sm:$0xff]  ;;  %v779_v51 = vadd.f32 %v2462_v30, %v710_v47 }
 0x1d8   :  { %v1198_v24 = vld [vmem:[#allocation2 + $0x38] sm:$0xff] }
 0x1d9   :  { %v1046_v33 = vpop.f32.mrf.mxu2  ;;  %v1059_v26 = vadd.f32 %v1044_v54, %v1000_v21  ;;  %v914_v34 = vadd.f32 %v900_v46, %v845_v55  ;;  %v902_v6 = vpop.f32.mrf.mxu0 }
 0x1da   :  { %v1047_v61 = vadd.f32 %v2472_v12, %v1046_v33  ;;  %v971_v7 = vpop.f32.mrf.mxu1 }
 0x1db   :  { %v2507_v56 = vmax.f32 %v1059_v26, 0.0  ;;  %v983_v23 = vadd.f32 %v969_v48, %v914_v34  ;;  %v1084_v48 = vld [vmem:[#allocation2 + $0x34] sm:$0xff] }
 0x1dc   :  { %v2516_v2 = vld [vmem:[#allocation2 + $0x1e] sm:$0xff] }
 0x1dd   :  { %v2518_v31 = vld [vmem:[#allocation2 + $0x1c] sm:$0xff]  ;;  %1075 = vst.msk [vmem:[#allocation2 + $0x28] sm:$0xff] %vm32_vm0, %v2507_v56  ;;  %v993_v32 = vadd.f32 %v2467_v4, %v983_v23  ;;  %v1103_v27 = vpack.c.bf16 %v2516_v2, %v2509_v57 }
 0x1de   :  { %v2520_v35 = vld [vmem:[#allocation2 + $0x20] sm:$0xff]  ;;  %v1089_v28 = vpack.c.bf16 %v2518_v31, %v2511_v58  ;;  %v833_v11 = vpop.f32.mrf.mxu3 }
 0x1df   :  { %v1203_v36 = vpack.c.bf16 %v2520_v35, %v2530_v14  ;;  %v1001_v8 = vmax.f32 %v993_v32, 0.0  ;;  %v846_v10 = vadd.f32 %v833_v11, %v777_v59  ;;  %1980 = vmatmul.msk.bf16.gmra.mxu3 %vm32_vm0, %v1103_v27  ;;  %v1257_v63 = vld [vmem:[#allocation2 + $0x1a] sm:$0xff] }
 0x1e0   :  { %1988 = vmatmul.msk.bf16.gmra.mxu0 %vm32_vm0, %v1089_v28 }
 0x1e1   :  { %v1048_v37 = vpop.f32.mrf.mxu2  ;;  %1996 = vmatmul.msk.bf16.gmra.mxu1 %vm32_vm0, %v1203_v36  ;;  %v1060_v39 = vadd.f32 %v1047_v61, %v1001_v8  ;;  %v915_v40 = vadd.f32 %v902_v6, %v846_v10  ;;  %v905_v16 = vpop.f32.mrf.mxu0 }
 0x1e2   :  { %v1049_v13 = vadd.f32 %v2472_v12, %v1048_v37  ;;  %v974_v1 = vpop.f32.mrf.mxu1  ;;  %v1783_v37 = vpack.c.bf16 %v2507_v56, %v2507_v56 }
 0x1e3   :  { %v1068_v3 = vmax.f32 %v1060_v39, 0.0  ;;  %v984_v18 = vadd.f32 %v971_v7, %v915_v40 }
 0x1e4   :  { %v1258_v44 = vld [vmem:[#allocation2 + $0x22] sm:$0xff]  ;;  %v1791_v43 = vunpack.c.l.b16 %v1783_v37 }
 0x1e5   :  { %1076 = vst.msk [vmem:[#allocation2 + $0x40] sm:$0xff] %vm32_vm0, %v1068_v3  ;;  %v994_v22 = vadd.f32 %v2467_v4, %v984_v18  ;;  %v1264_v45 = vpack.c.bf16 %v1258_v44, %v1257_v63 }
 0x1e6   :  { %v836_v17 = vpop.f32.mrf.mxu3  ;;  %v1793_v56 = vrot.slane %v1791_v43, 7 }
 0x1e7   :  { %v1002_v5 = vmax.f32 %v994_v22, 0.0  ;;  %v847_v46 = vadd.f32 %v836_v17, %v778_v9  ;;  %2004 = vmatmul.msk.bf16.gmra.mxu2 %vm32_vm0, %v1264_v45 }
 0x1e9   :  { %v1061_v15 = vadd.f32 %v1049_v13, %v1002_v5  ;;  %v916_v19 = vadd.f32 %v905_v16, %v847_v46  ;;  %v1051_v20 = vpop.f32.mrf.mxu2  ;;  %v907_v23 = vpop.f32.mrf.mxu0 }
 0x1ea   :  { %v1052_v52 = vadd.f32 %v2472_v12, %v1051_v20  ;;  %v976_v6 = vpop.f32.mrf.mxu1  ;;  %v1319_v20 = vld [vmem:[#allocation2 + $0x24] sm:$0xff] }
 0x1eb   :  { %v1069_v49 = vmax.f32 %v1061_v15, 0.0  ;;  %v985_v50 = vadd.f32 %v974_v1, %v916_v19  ;;  %v1324_v1 = vpack.c.bf16 %v2511_v58, %v2486_v42  ;;  %v1385_v15 = vpack.c.bf16 %v2509_v57, %v2484_v41 }
 0x1ec   :  { %v2548_v53 = vld [vmem:[#allocation2 + $0x3e] sm:$0xff]  ;;  %v1446_v19 = vpack.c.bf16 %v2530_v14, %v2488_v62 }
 0x1ed   :  { %v2550_v21 = vld [vmem:[#allocation2 + $0x3c] sm:$0xff]  ;;  %1077 = vst.msk [vmem:[#allocation2 + $0x48] sm:$0xff] %vm32_vm0, %v1069_v49  ;;  %v995_v29 = vadd.f32 %v2467_v4, %v985_v50  ;;  %v1104_v55 = vpack.c.bf16 %v2548_v53, %v1098_v0  ;;  %v1380_v0 = vld [vmem:[#allocation2 + $0x26] sm:$0xff] }
 0x1ee   :  { %v2552_v54 = vld [vmem:[#allocation2 + $0x40] sm:$0xff]  ;;  %v1090_v33 = vpack.c.bf16 %v2550_v21, %v1084_v48  ;;  %v838_v26 = vpop.f32.mrf.mxu3  ;;  %v1441_v48 = vld [vmem:[#allocation2 + $0x28] sm:$0xff]  ;;  %v1386_v49 = vpack.c.bf16 %v1380_v0, %v2516_v2  ;;  %v2122_v0 = vld [vmem:[#allocation3 + $0x90] sm:$0xff] }
 0x1ef   :  { %v1204_v25 = vpack.c.bf16 %v2552_v54, %v1198_v24  ;;  %v1003_v30 = vmax.f32 %v995_v29, 0.0  ;;  %v848_v34 = vadd.f32 %v838_v26, %v779_v51  ;;  %1981 = vmatmul.msk.bf16.gmra.mxu3 %vm32_vm0, %v1104_v55  ;;  %v1259_v28 = vld [vmem:[#allocation2 + $0x3a] sm:$0xff]  ;;  %v1325_v24 = vpack.c.bf16 %v1319_v20, %v2518_v31 }
 0x1f0   :  { %1989 = vmatmul.msk.bf16.gmra.mxu0 %vm32_vm0, %v1090_v33  ;;  %v1447_v42 = vpack.c.bf16 %v1441_v48, %v2520_v35 }
 0x1f1   :  { %1997 = vmatmul.msk.bf16.gmra.mxu1 %vm32_vm0, %v1204_v25  ;;  %v1062_v59 = vadd.f32 %v1052_v52, %v1003_v30  ;;  %v917_v60 = vadd.f32 %v907_v23, %v848_v34  ;;  %v1053_v27 = vpop.f32.mrf.mxu2 }
 0x1f2   :  { %v1054_v10 = vadd.f32 %v2472_v12, %v1053_v27 }
 0x1f3   :  { %v1070_v32 = vmax.f32 %v1062_v59, 0.0  ;;  %v986_v61 = vadd.f32 %v976_v6, %v917_v60 }
 0x1f4   :  { %v1260_v7 = vld [vmem:[#allocation2 + $0x42] sm:$0xff] }
 0x1f5   :  { %1078 = vst.msk [vmem:[#allocation2 + $0x50] sm:$0xff] %vm32_vm0, %v1070_v32  ;;  %v996_v11 = vadd.f32 %v2467_v4, %v986_v61  ;;  %v1265_v36 = vpack.c.bf16 %v1260_v7, %v1259_v28  ;;  %v1100_v40 = vld [vmem:[#allocation2 + $0x46] sm:$0xff] }
 0x1f6   :  { %v1086_v3 = vld [vmem:[#allocation2 + $0x44] sm:$0xff]  ;;  %v1387_v62 = vpack.c.bf16 %v1100_v40, %v2548_v53 }
 0x1f7   :  { %v1004_v8 = vmax.f32 %v996_v11, 0.0  ;;  %2005 = vmatmul.msk.bf16.gmra.mxu2 %vm32_vm0, %v1265_v36  ;;  %v1200_v18 = vld [vmem:[#allocation2 + $0x48] sm:$0xff]  ;;  %v1326_v41 = vpack.c.bf16 %v1086_v3, %v2550_v21 }
 0x1f8   :  { %v1448_v57 = vpack.c.bf16 %v1200_v18, %v2552_v54 }
 0x1f9   :  { %v1063_v38 = vadd.f32 %v1054_v10, %v1004_v8 }
 0x1fb   :  { %v1071_v39 = vmax.f32 %v1063_v38, 0.0 }
 0x1fc   :  { %v1101_v63 = vld [vmem:[#allocation2 + $0x4e] sm:$0xff] }
 0x1fd   :  { %v1087_v44 = vld [vmem:[#allocation2 + $0x4c] sm:$0xff]  ;;  %v1784_v22 = vpack.c.bf16 %v1071_v39, %v1071_v39  ;;  %1079 = vst.msk [vmem:[#allocation2 + $0x58] sm:$0xff] %vm32_vm0, %v1071_v39  ;;  %v1105_v4 = vpack.c.bf16 %v1101_v63, %v1100_v40 }
 0x1fe   :  { %v1201_v9 = vld [vmem:[#allocation2 + $0x50] sm:$0xff]  ;;  %v1091_v45 = vpack.c.bf16 %v1087_v44, %v1086_v3  ;;  %v2125_v39 = vld [vmem:[#allocation3 + $0xa8] sm:$0xff] }
 0x1ff   :  { %v1205_v12 = vpack.c.bf16 %v1201_v9, %v1200_v18  ;;  %v1792_v16 = vunpack.c.l.b16 %v1784_v22  ;;  %1982 = vmatmul.msk.bf16.gmra.mxu3 %vm32_vm0, %v1105_v4  ;;  %v1261_v13 = vld [vmem:[#allocation2 + $0x4a] sm:$0xff]  ;;  %1550 = vmatpush.bf16.msrb.mxu2 %v2125_v39  ;;  %v2123_v18 = vld [vmem:[#allocation3 + $0x98] sm:$0xff] }
 0x200   :  { %1990 = vmatmul.msk.bf16.gmra.mxu0 %vm32_vm0, %v1091_v45  ;;  %1582 = vmatpush.bf16.msrb.mxu3 %v2123_v18 }
 0x201   :  { %1998 = vmatmul.msk.bf16.gmra.mxu1 %vm32_vm0, %v1205_v12  ;;  %v1794_v17 = vrot.slane %v1792_v16, 6 }
 0x203   :  { %v2573_v5 = vsel %vm1525_vm3, %v1794_v17, %v1793_v56 }
 0x204   :  { %v1262_v46 = vld [vmem:[#allocation2 + $0x52] sm:$0xff]  ;;  %1583 = vmatpush.bf16.msrb.mxu3 %v2122_v0 }
 0x205   :  { %v1266_v47 = vpack.c.bf16 %v1262_v46, %v1261_v13  ;;  %v1323_v58 = vld [vmem:[#allocation2 + $0x54] sm:$0xff] }
 0x206   :  { %v1384_v2 = vld [vmem:[#allocation2 + $0x56] sm:$0xff]  ;;  %v1327_v35 = vpack.c.bf16 %v1323_v58, %v1087_v44 }
 0x207   :  { %2006 = vmatmul.msk.bf16.gmra.mxu2 %vm32_vm0, %v1266_v47  ;;  %v1445_v31 = vld [vmem:[#allocation2 + $0x58] sm:$0xff]  ;;  %v1388_v14 = vpack.c.bf16 %v1384_v2, %v1101_v63 }
 0x208   :  { %v1449_v50 = vpack.c.bf16 %v1445_v31, %v1201_v9  ;;  %v2131_v0 = vld [vmem:[#allocation3 + $0xd8] sm:$0xff] }
 0x20f   :  { %2011 = vmatmul.msk.bf16.vlgmr.msra.gmra.mxu3 %vm32_vm0, %v1324_v1 }
 0x210   :  { %2019 = vmatmul.msk.bf16.vlgmr.msrb.gmra.mxu0 %vm32_vm0, %v1385_v15 }
 0x211   :  { %2027 = vmatmul.msk.bf16.vlgmr.msrb.gmra.mxu1 %vm32_vm0, %v1446_v19  ;;  %v2124_v19 = vld [vmem:[#allocation3 + $0xa0] sm:$0xff] }
 0x212   :  { %1551 = vmatpush.bf16.msrb.mxu2 %v2124_v19 }
 0x21f   :  { %2012 = vmatmul.msk.bf16.gmra.mxu3 %vm32_vm0, %v1325_v24 }
 0x220   :  { %2020 = vmatmul.msk.bf16.gmra.mxu0 %vm32_vm0, %v1386_v49 }
 0x221   :  { %2028 = vmatmul.msk.bf16.gmra.mxu1 %vm32_vm0, %v1447_v42 }
 0x22f   :  { %2013 = vmatmul.msk.bf16.gmra.mxu3 %vm32_vm0, %v1326_v41 }
 0x230   :  { %2021 = vmatmul.msk.bf16.gmra.mxu0 %vm32_vm0, %v1387_v62 }
 0x231   :  { %2029 = vmatmul.msk.bf16.gmra.mxu1 %vm32_vm0, %v1448_v57 }
 0x23f   :  { %2014 = vmatmul.msk.bf16.gmra.mxu3 %vm32_vm0, %v1327_v35 }
 0x240   :  { %2022 = vmatmul.msk.bf16.gmra.mxu0 %vm32_vm0, %v1388_v14 }
 0x241   :  { %2030 = vmatmul.msk.bf16.gmra.mxu1 %vm32_vm0, %v1449_v50 }
 0x24d   :  { %v1178_v51 = vpop.f32.mrf.mxu0 }
 0x24e   :  { %v1235_v52 = vpop.f32.mrf.mxu1 }
 0x252   :  { %v1135_v53 = vpop.f32.mrf.mxu3 }
 0x253   :  { %v2127_v53 = vld [vmem:[#allocation3 + $0xb8] sm:$0xff] }
 0x254   :  { %1618 = vmatpush.bf16.msra.mxu2 %v2127_v53 }
 0x255   :  { %v1179_v21 = vpop.f32.mrf.mxu0 }
 0x256   :  { %v1236_v54 = vpop.f32.mrf.mxu1  ;;  %v2129_v21 = vld [vmem:[#allocation3 + $0xc8] sm:$0xff] }
 0x257   :  { %1660 = vmatpush.bf16.msra.mxu3 %v2129_v21 }
 0x25a   :  { %v1136_v29 = vpop.f32.mrf.mxu3  ;;  %v1296_v55 = vpop.f32.mrf.mxu2 }
 0x25b   :  { %v2147_v55 = vld [vmem:[%s2637_s2 + $0x3] ss:$0 sm:$0xff] }
 0x25d   :  { %v1181_v33 = vpop.f32.mrf.mxu0 }
 0x25e   :  { %v1238_v25 = vpop.f32.mrf.mxu1 }
 0x262   :  { %v1138_v26 = vpop.f32.mrf.mxu3  ;;  %v1297_v30 = vpop.f32.mrf.mxu2 }
 0x263   :  { %v1182_v34 = vadd.f32 %v1181_v33, %v1138_v26  ;;  %v2126_v33 = vld [vmem:[#allocation3 + $0xb0] sm:$0xff] }
 0x264   :  { %1619 = vmatpush.bf16.msra.mxu2 %v2126_v33 }
 0x265   :  { %v1183_v23 = vpop.f32.mrf.mxu0  ;;  %v1251_v60 = vadd.f32 %v1238_v25, %v1182_v34  ;;  %v2128_v25 = vld [vmem:[#allocation3 + $0xc0] sm:$0xff] }
 0x266   :  { %v1240_v59 = vpop.f32.mrf.mxu1  ;;  %1661 = vmatpush.bf16.msra.mxu3 %v2128_v25 }
 0x26a   :  { %v1140_v6 = vpop.f32.mrf.mxu3  ;;  %v1299_v32 = vpop.f32.mrf.mxu2 }
 0x26b   :  { %v1184_v61 = vadd.f32 %v1183_v23, %v1140_v6  ;;  %v1312_v27 = vadd.f32 %v1299_v32, %v1251_v60 }
 0x26d   :  { %v1186_v28 = vpop.f32.mrf.mxu0  ;;  %v1252_v11 = vadd.f32 %v1240_v59, %v1184_v61 }
 0x26e   :  { %v1243_v7 = vpop.f32.mrf.mxu1 }
 0x272   :  { %v1143_v36 = vpop.f32.mrf.mxu3  ;;  %v1301_v8 = vpop.f32.mrf.mxu2 }
 0x273   :  { %v1313_v10 = vadd.f32 %v1301_v8, %v1252_v11 }
 0x275   :  { %v1187_v37 = vpop.f32.mrf.mxu0 }
 0x276   :  { %v1244_v38 = vpop.f32.mrf.mxu1 }
 0x27a   :  { %v1144_v40 = vpop.f32.mrf.mxu3  ;;  %v1304_v3 = vpop.f32.mrf.mxu2 }
 0x27d   :  { %v1189_v43 = vpop.f32.mrf.mxu0 }
 0x27e   :  { %v1246_v63 = vpop.f32.mrf.mxu1 }
 0x282   :  { %v1146_v44 = vpop.f32.mrf.mxu3  ;;  %v1305_v9 = vpop.f32.mrf.mxu2 }
 0x283   :  { %v1190_v22 = vadd.f32 %v1189_v43, %v1146_v44 }
 0x285   :  { %v1191_v4 = vpop.f32.mrf.mxu0  ;;  %v1253_v12 = vadd.f32 %v1246_v63, %v1190_v22 }
 0x286   :  { %v1248_v45 = vpop.f32.mrf.mxu1 }
 0x28a   :  { %v1148_v16 = vpop.f32.mrf.mxu3  ;;  %v1307_v54 = vpop.f32.mrf.mxu2 }
 0x28b   :  { %v1192_v56 = vadd.f32 %v1191_v4, %v1148_v16  ;;  %v1314_v34 = vadd.f32 %v1307_v54, %v1253_v12 }
 0x28d   :  { %v1418_v17 = vpop.f32.mrf.mxu0  ;;  %v1254_v46 = vadd.f32 %v1248_v45, %v1192_v56 }
 0x28e   :  { %v1479_v13 = vpop.f32.mrf.mxu1 }
 0x292   :  { %v1357_v47 = vpop.f32.mrf.mxu3  ;;  %v1309_v28 = vpop.f32.mrf.mxu2 }
 0x293   :  { %v1315_v8 = vadd.f32 %v1309_v28, %v1254_v46 }
 0x295   :  { %v1419_v1 = vpop.f32.mrf.mxu0 }
 0x296   :  { %v1480_v15 = vpop.f32.mrf.mxu1 }
 0x29a   :  { %v1358_v20 = vpop.f32.mrf.mxu3 }
 0x29d   :  { %v1421_v48 = vpop.f32.mrf.mxu0 }
 0x29e   :  { %v1482_v24 = vpop.f32.mrf.mxu1 }
 0x2a2   :  { %v1360_v49 = vpop.f32.mrf.mxu3 }
 0x2a3   :  { %v1373_v31 = vadd.f32 %v1360_v49, %v1312_v27 }
 0x2a5   :  { %v1423_v42 = vpop.f32.mrf.mxu0  ;;  %v1434_v50 = vadd.f32 %v1421_v48, %v1373_v31  ;;  %v2133_v48 = vld [vmem:[#allocation3 + $0xe8] sm:$0xff] }
 0x2a6   :  { %v1484_v41 = vpop.f32.mrf.mxu1 }
 0x2a7   :  { %v1495_v29 = vadd.f32 %v1482_v24, %v1434_v50 }
 0x2a9   :  { %v1501_v30 = vadd.f32 %v2147_v55, %v1495_v29  ;;  %v2135_v29 = vld [vmem:[#allocation3 + $0xf8] sm:$0xff] }
 0x2aa   :  { %v1362_v62 = vpop.f32.mrf.mxu3 }
 0x2ab   :  { %v1374_v51 = vadd.f32 %v1362_v62, %v1313_v10  ;;  %v1505_v32 = vmax.f32 %v1501_v30, 0.0  ;;  %v2134_v30 = vld [vmem:[#allocation3 + $0xf0] sm:$0xff] }
 0x2ad   :  { %v1426_v57 = vpop.f32.mrf.mxu0  ;;  %v1435_v26 = vadd.f32 %v1423_v42, %v1374_v51  ;;  %v1509_v36 = vpack.c.bf16 %v1505_v32, %v1505_v32 }
 0x2ae   :  { %v1487_v58 = vpop.f32.mrf.mxu1  ;;  %v2130_v57 = vld [vmem:[#allocation3 + $0xd0] sm:$0xff] }
 0x2af   :  { %v1496_v23 = vadd.f32 %v1484_v41, %v1435_v26  ;;  %v1521_v3 = vunpack.c.l.b16 %v1509_v36  ;;  %v2132_v58 = vld [vmem:[#allocation3 + $0xe0] sm:$0xff]  ;;  %v2138_v26 = vld [vmem:[#allocation3 + $0x110] sm:$0xff] }
 0x2b0   :  { %1849 = vmatpush.bf16.msra.mxu0 %v2138_v26 }
 0x2b1   :  { %v1502_v7 = vadd.f32 %v2147_v55, %v1496_v23  ;;  %v1523_v45 = vrot.slane %v1521_v3, 5  ;;  %v1557_v12 = vrot.slane %v1521_v3, 3  ;;  %v1593_v16 = vrot.slane %v1521_v3, 7 }
 0x2b2   :  { %v1365_v2 = vpop.f32.mrf.mxu3 }
 0x2b3   :  { %v1506_v37 = vmax.f32 %v1502_v7, 0.0 }
 0x2b5   :  { %v1427_v35 = vpop.f32.mrf.mxu0  ;;  %v1626_v44 = vpack.c.bf16 %v1506_v37, %v1506_v37 }
 0x2b6   :  { %v1488_v14 = vpop.f32.mrf.mxu1 }
 0x2b7   :  { %v1634_v47 = vunpack.c.l.b16 %v1626_v44 }
 0x2b9   :  { %v1636_v41 = vrot.slane %v1634_v47, 1  ;;  %v1672_v2 = vrot.slane %v1634_v47, 3  ;;  %v1709_v31 = vrot.slane %v1634_v47, 5  ;;  %v1746_v35 = vrot.slane %v1634_v47, 7 }
 0x2ba   :  { %v1366_v52 = vpop.f32.mrf.mxu3 }
 0x2bd   :  { %v1429_v59 = vpop.f32.mrf.mxu0 }
 0x2be   :  { %v1490_v61 = vpop.f32.mrf.mxu1 }
 0x2c2   :  { %v1368_v60 = vpop.f32.mrf.mxu3 }
 0x2c3   :  { %v1375_v6 = vadd.f32 %v1368_v60, %v1314_v34 }
 0x2c5   :  { %v1436_v27 = vadd.f32 %v1429_v59, %v1375_v6  ;;  %v1431_v18 = vpop.f32.mrf.mxu0  ;;  %v1796_v59 = vpack.c.b16 %v2573_v5, %v2573_v5  ;;  %v2137_v6 = vld [vmem:[#allocation3 + $0x108] sm:$0xff] }
 0x2c6   :  { %v1492_v9 = vpop.f32.mrf.mxu1  ;;  %1850 = vmatpush.bf16.msra.mxu0 %v2137_v6 }
 0x2c7   :  { %v1497_v11 = vadd.f32 %v1490_v61, %v1436_v27 }
 0x2c9   :  { %v1503_v10 = vadd.f32 %v2147_v55, %v1497_v11 }
 0x2ca   :  { %v1370_v38 = vpop.f32.mrf.mxu3 }
 0x2cb   :  { %v1507_v39 = vmax.f32 %v1503_v10, 0.0  ;;  %v1376_v40 = vadd.f32 %v1370_v38, %v1315_v8 }
 0x2cd   :  { %v1510_v43 = vpack.c.bf16 %v1507_v39, %v1507_v39  ;;  %v1437_v63 = vadd.f32 %v1431_v18, %v1376_v40 }
 0x2cf   :  { %v1522_v22 = vunpack.c.l.b16 %v1510_v43  ;;  %v1498_v4 = vadd.f32 %v1492_v9, %v1437_v63  ;;  %v2148_v63 = vld [vmem:[%s2637_s2 + $0x4] ss:$0 sm:$0xff] }
 0x2d1   :  { %v1524_v56 = vrot.slane %v1522_v22, 4  ;;  %v1558_v17 = vrot.slane %v1522_v22, 2  ;;  %v1594_v13 = vrot.slane %v1522_v22, 6  ;;  %v1504_v46 = vadd.f32 %v2147_v55, %v1498_v4  ;;  %v2136_v55 = vld [vmem:[#allocation3 + $0x100] sm:$0xff] }
 0x2d2   :  { %v2149_v4 = vld [vmem:[%s2637_s2 + $0x5] ss:$0 sm:$0xff] }
 0x2d3   :  { %v1526_v1 = vsel %vm1525_vm3, %v1524_v56, %v1523_v45  ;;  %v1559_v15 = vsel %vm1525_vm3, %v1558_v17, %v1557_v12  ;;  %v1595_v19 = vsel %vm1525_vm3, %v1594_v13, %v1593_v16  ;;  %v1508_v20 = vmax.f32 %v1504_v46, 0.0 }
 0x2d4   :  { %v1527_v24 = vpack.c.b16 %v1526_v1, %v1526_v1  ;;  %v1560_v49 = vpack.c.b16 %v1559_v15, %v1559_v15  ;;  %v1596_v33 = vpack.c.b16 %v1595_v19, %v1595_v19  ;;  %v2150_v1 = vld [vmem:[%s2637_s2 + $0x6] ss:$0 sm:$0xff]  ;;  %s1875_s2 = sshll.u32 %s2211_s19, 4  ;;  %s1876_s2 = int_to_ptr.vmem [resolvable:$true] %s1875_s2 }
 0x2d5   :  { %v1627_v42 = vpack.c.bf16 %v1508_v20, %v1508_v20 }
 0x2d6   :  { %2039 = vmatmul.msk.bf16.vlgmr.msrb.gmra.mxu2 %vm1540_vm4, %v1527_v24  ;;  %2048 = vmatmul.msk.bf16.vlgmr.msrb.gmra.mxu3 %vm1540_vm4, %v1560_v49 }
 0x2d7   :  { %v1635_v62 = vunpack.c.l.b16 %v1627_v42  ;;  %1697 = vmatpush.bf16.msrb.mxu2 %v2131_v0  ;;  %1734 = vmatpush.bf16.msrb.mxu3 %v2133_v48 }
 0x2d9   :  { %v1637_v14 = vsel %vm1525_vm3, %v1635_v62, %v1636_v41  ;;  %v1673_v50 = vrot.slane %v1635_v62, 2  ;;  %v1710_v51 = vrot.slane %v1635_v62, 4  ;;  %v1747_v52 = vrot.slane %v1635_v62, 6 }
 0x2da   :  { %v1638_v25 = vpack.c.b16 %v1637_v14, %v1637_v14 }
 0x2db   :  { %1698 = vmatpush.bf16.msrb.mxu2 %v2130_v57  ;;  %1735 = vmatpush.bf16.msrb.mxu3 %v2132_v58  ;;  %v1674_v53 = vsel %vm1525_vm3, %v1673_v50, %v1672_v2  ;;  %v1711_v21 = vsel %vm1525_vm3, %v1710_v51, %v1709_v31  ;;  %v1748_v54 = vsel %vm1525_vm3, %v1747_v52, %v1746_v35 }
 0x2dc   :  { %v1675_v34 = vpack.c.b16 %v1674_v53, %v1674_v53  ;;  %v1712_v23 = vpack.c.b16 %v1711_v21, %v1711_v21  ;;  %v1749_v60 = vpack.c.b16 %v1748_v54, %v1748_v54 }
 0x2e6   :  { %2057 = vmatmul.msk.bf16.vlgmr.msra.gmra.mxu2 %vm1540_vm4, %v1596_v33  ;;  %2066 = vmatmul.msk.bf16.vlgmr.msra.gmra.mxu3 %vm1540_vm4, %v1638_v25 }
 0x2e7   :  { %1771 = vmatpush.bf16.msra.mxu2 %v2135_v29  ;;  %1813 = vmatpush.bf16.msra.mxu3 %v2136_v55 }
 0x2eb   :  { %1772 = vmatpush.bf16.msra.mxu2 %v2134_v30 }
 0x2f6   :  { %2075 = vmatmul.msk.bf16.vlgmr.msrb.gmra.mxu2 %vm1540_vm4, %v1675_v34  ;;  %2084 = vmatmul.msk.bf16.vlgmr.msrb.gmra.mxu3 %vm1540_vm4, %v1712_v23 }
 0x306   :  { %2093 = vmatmul.msk.bf16.vlgmr.msra.gmra.mxu2 %vm1540_vm4, %v1749_v60  ;;  %2098 = vmatmul.msk.bf16.vlgmr.msra.gmra.mxu3 %vm32_vm0, %v1796_v59 }
 0x359   :  { %v1553_v32 = vpop.f32.mrf.mxu2  ;;  %v1585_v61 = vpop.f32.mrf.mxu3 }
 0x35a   :  { %v1586_v38 = vadd.f32 %v1585_v61, %v1553_v32 }
 0x361   :  { %v1555_v27 = vpop.f32.mrf.mxu2  ;;  %v1587_v28 = vpop.f32.mrf.mxu3 }
 0x369   :  { %v1621_v7 = vpop.f32.mrf.mxu2  ;;  %v1663_v11 = vpop.f32.mrf.mxu3 }
 0x36a   :  { %v1625_v39 = vadd.f32 %v1621_v7, %v1586_v38 }
 0x36c   :  { %v1667_v3 = vadd.f32 %v1663_v11, %v1625_v39 }
 0x371   :  { %v1623_v36 = vpop.f32.mrf.mxu2  ;;  %v1665_v8 = vpop.f32.mrf.mxu3 }
 0x379   :  { %v1700_v10 = vpop.f32.mrf.mxu2  ;;  %v1737_v37 = vpop.f32.mrf.mxu3 }
 0x37a   :  { %v1704_v18 = vadd.f32 %v1700_v10, %v1667_v3 }
 0x37c   :  { %v1741_v43 = vadd.f32 %v1737_v37, %v1704_v18 }
 0x381   :  { %v1702_v5 = vpop.f32.mrf.mxu2  ;;  %v1739_v40 = vpop.f32.mrf.mxu3 }
 0x389   :  { %v1774_v44 = vpop.f32.mrf.mxu2  ;;  %v1815_v9 = vpop.f32.mrf.mxu3 }
 0x38a   :  { %v1778_v22 = vadd.f32 %v1774_v44, %v1741_v43  ;;  %v1816_v16 = vadd.f32 %v2149_v4, %v1815_v9 }
 0x38c   :  { %v1781_v45 = vadd.f32 %v2148_v63, %v1778_v22 }
 0x38e   :  { %v1782_v12 = vmax.f32 %v1781_v45, 0.0 }
 0x390   :  { %v1819_v56 = vadd.f32 %v1816_v16, %v1782_v12 }
 0x391   :  { %v1776_v17 = vpop.f32.mrf.mxu2  ;;  %v1817_v13 = vpop.f32.mrf.mxu3 }
 0x392   :  { %v1820_v46 = vmax.f32 %v1819_v56, 0.0 }
 0x394   :  { %v1821_v47 = vpack.c.bf16 %v1820_v46, %v1820_v46 }
 0x396   :  { %2107 = vmatmul.msk.bf16.vlgmr.msra.gmra.mxu0 %vm1540_vm4, %v1821_v47 }
 0x413   :  { %v1852_v15 = vpop.f32.mrf.mxu0 }
 0x414   :  { %v1853_v19 = vadd.f32 %v2150_v1, %v1852_v15 }
 0x416   :  { %v1856_v20 = vsel %vm92_vm1, %v1853_v19, -inf }
 0x417   :  { %1857 = vmax.xlane.f32.xlu0 %v1856_v20 }
 0x41b   :  { %v1854_v0 = vpop.f32.mrf.mxu0 }
 0x48a   :  { %v1858_v48 = vpop.xlane.xlu0 %1857 }
 0x48b   :  { %v1859_v24 = vsub.f32 %v1853_v19, %v1858_v48 }
 0x48d   :  { %v1860_v49 = vmul.f32 1.442695, %v1859_v24 }
 0x48f   :  { %2151 = vpow2.f32 %v1860_v49 }
 0x495   :  { %v2152_v42 = vpop.eup %2151 }
 0x496   :  { %v1862_v41 = vsel %vm92_vm1, %v2152_v42, 0.0 }
 0x497   :  { %1863 = vadd.xlane.f32.xlu0 %v1862_v41 }
 0x50a   :  { %v1864_v62 = vpop.xlane.xlu0 %1863 }
 0x50b   :  { %2153 = vlog2.f32 %v1864_v62 }
 0x511   :  { %v2154_v57 = vpop.eup %2153 }
 0x512   :  { %v1866_v58 = vmul.f32 0.6931472, %v2154_v57 }
 0x514   :  { %v1867_v2 = vadd.f32 %v1866_v58, %v1858_v48 }
 0x516   :  { %v1868_v31 = vsub.f32 %v1853_v19, %v1867_v2 }
 0x518   :  { %1869 = vst [vmem:[#allocation6] sm:$0x3] %v1868_v31 }
 0x519   :  { %1880 = dma.vmem_to_hbm [thread:$0]  %s1876_s2, 32, %s1878_s22, [#allocation5]  }
 0x51a   :  { %2205 = dma.done.wait [#allocation5], 32  }
 0x51b   :  { %2206 = vsyncadd [#allocation5], 4294967264 }
 0x51c   :  { %1885 = vsyncpa [#allocation4], 1 }
 0x51d   :  { %1886 = vsyncpa [#allocation5], 1 }

</bundles_post_ra>
